<compile_context>
chip_gen: v7x
topology: tpu7x:2x2x1
jax: 0.10.0
libtpu: 0.0.40
codegen_flags: <defaults>
</compile_context>

<pallas_src>
import math

import jax
import jax.numpy as jnp
from jax import lax
from jax.experimental import pallas as pl
from jax.experimental.pallas import tpu as pltpu

# ---- small config consistent with the module's constructor ----
SRC_VOCAB_SIZE = 50
EMBED_DIM = 32
NUM_LAYERS = 2
HEADS = 4
HEAD_DIM = EMBED_DIM // HEADS
FORWARD_EXPANSION = 4
FF_DIM = FORWARD_EXPANSION * EMBED_DIM          # 128 == one lane group
MAX_LENGTH = 16
BATCH = 2
SEQ = 8
ROWS = BATCH * SEQ                              # 16 activation rows, (n, s) order
VOCAB_PAD = 64                                  # one-hot gather width (>= vocab)
LN_EPS = 1e-5

# weight-slab row offsets (per layer); all are multiples of the bf16 sublane
# tile (16) and every lane slice starts at lane 0 -> no in-kernel relayouts.
_W_QKV = 0                    # rows [  0, 32)  lanes [0, 96)
_W_O = EMBED_DIM              # rows [ 32, 64)  lanes [0, 32)
_W_1 = 2 * EMBED_DIM          # rows [ 64, 96)  lanes [0,128)
_W_2 = 3 * EMBED_DIM          # rows [ 96,224)  lanes [0, 32)
_W_ROWS = 3 * EMBED_DIM + FF_DIM


# --------------------------------------------------------------------------
# Pallas kernel: embedding + full 2-layer encoder
# --------------------------------------------------------------------------
def bert_encoder_kernel(tok_ref, emb_ref, w_ref, b_ref, out_ref):
    """Rows are ordered (n, s): row = n*SEQ + s.

    tok_ref : (ROWS, 1)            int32
    emb_ref : (VOCAB_PAD+ROWS, E)  f32   [padded word table ; positional rows]
    w_ref   : (L, 224, 128)        bf16  packed weights (scale folded into Q)
    b_ref   : (L, 8, 128)          f32   packed biases / LayerNorm params
    out_ref : (ROWS, E)            f32
    """
    E, H, D, FF = EMBED_DIM, HEADS, HEAD_DIM, FF_DIM
    bf16 = jnp.bfloat16

    # ---- embedding: exact one-hot MXU gather + precomputed positional rows ----
    tok = tok_ref[...]                                                    # (16,1)
    vocab_iota = lax.broadcasted_iota(jnp.int32, (ROWS, VOCAB_PAD), 1)
    one_hot = (vocab_iota == tok).astype(jnp.float32)                     # (16,64)
    word = jnp.dot(one_hot, emb_ref[0:VOCAB_PAD, :],
                   preferred_element_type=jnp.float32)                    # (16,32)
    x = word + emb_ref[VOCAB_PAD:VOCAB_PAD + ROWS, :]                     # (16,32) f32

    # ---- attention validity: rows attend iff they share the seq position ----
    # (PyTorch quirk: non-batch_first MHA -> attention over the length-2 batch
    #  axis, batched over the 8 sequence positions.)
    ri = lax.broadcasted_iota(jnp.int32, (ROWS, ROWS), 0)
    ci = lax.broadcasted_iota(jnp.int32, (ROWS, ROWS), 1)
    same_seq = (ri % SEQ) == (ci % SEQ)
    neg_big = jnp.float32(-1e30)

    def layernorm(t, g, b):
        mu = jnp.mean(t, axis=-1, keepdims=True)
        var = jnp.mean((t - mu) ** 2, axis=-1, keepdims=True)
        return (t - mu) * lax.rsqrt(var + LN_EPS) * g + b

    for li in range(NUM_LAYERS):                                          # unrolled (2)
        wl = w_ref.at[li]                                                 # (224,128) bf16 view
        bl = b_ref[li]                                                    # (8,128) f32 (1 vreg)

        # ---- packed QKV projection (1/sqrt(D) pre-folded into the Q part) ----
        qkv = jnp.dot(x.astype(bf16), wl[_W_QKV:_W_QKV + E, 0:3 * E],
                      preferred_element_type=jnp.float32) + bl[0:1, 0:3 * E]
        q = qkv[:, 0 * E:1 * E]
        k = qkv[:, 1 * E:2 * E]
        v = qkv[:, 2 * E:3 * E]

        # ---- attention as 2-D masked matmuls, unrolled over the 4 heads ----
        heads = []
        for h in range(H):
            sl = slice(h * D, (h + 1) * D)
            qh = q[:, sl].astype(bf16)                                    # (16,8)
            kh = k[:, sl].astype(bf16)                                    # (16,8)
            vh = v[:, sl].astype(bf16)                                    # (16,8)
            sc = lax.dot_general(qh, kh, (((1,), (1,)), ((), ())),
                                 preferred_element_type=jnp.float32)      # (16,16)
            sc = jnp.where(same_seq, sc, neg_big)
            sc = sc - jnp.max(sc, axis=-1, keepdims=True)
            pe = jnp.exp(sc)
            pr = pe * pl.reciprocal(jnp.sum(pe, axis=-1, keepdims=True),
                                    approx=True)
            heads.append(jnp.dot(pr.astype(bf16), vh,
                                 preferred_element_type=jnp.float32))     # (16,8)

        # ---- single packed output projection on the concatenated heads ----
        attn = jnp.dot(jnp.concatenate(heads, axis=-1).astype(bf16),
                       wl[_W_O:_W_O + E, 0:E],
                       preferred_element_type=jnp.float32) + bl[1:2, 0:E]

        # ---- residual + LayerNorm 1 (f32) ----
        y = layernorm(attn + x, bl[2:3, 0:E], bl[3:4, 0:E])

        # ---- feed-forward (bf16 MXU operands, f32 accumulation) ----
        h1 = jnp.dot(y.astype(bf16), wl[_W_1:_W_1 + E, 0:FF],
                     preferred_element_type=jnp.float32) + bl[4:5, 0:FF]
        h1 = jnp.maximum(h1, 0.0)
        ff = jnp.dot(h1.astype(bf16), wl[_W_2:_W_2 + FF, 0:E],
                     preferred_element_type=jnp.float32) + bl[5:6, 0:E]

        # ---- residual + LayerNorm 2 (f32) ----
        x = layernorm(ff + y, bl[6:7, 0:E], bl[7:8, 0:E])

    # Single (16,32) f32 store; lane-dense repacking is not worth it here.
    out_ref[...] = x.astype(out_ref.dtype)


# --------------------------------------------------------------------------
# One-time parameter packing (runs OUTSIDE the per-call jit path)
# --------------------------------------------------------------------------
def prepare_params(params):
    E, FF, L = EMBED_DIM, FF_DIM, NUM_LAYERS
    scale = 1.0 / math.sqrt(HEAD_DIM)

    word = params['word_embedding'].astype(jnp.float32)                   # (50,32)
    word_pad = jnp.zeros((VOCAB_PAD, E), jnp.float32).at[:SRC_VOCAB_SIZE].set(word)
    # positional rows for the fixed (n, s) row order: row r -> pos[r % SEQ]
    x_pos = jnp.tile(params['position_embedding'][:SEQ].astype(jnp.float32),
                     (BATCH, 1))                                           # (16,32)
    emb = jnp.concatenate([word_pad, x_pos], axis=0)                       # (80,32)

    w_slab = jnp.zeros((L, _W_ROWS, FF), jnp.float32)
    b_slab = jnp.zeros((L, 8, FF), jnp.float32)
    for li, l in enumerate(params['layers']):
        wqkv = jnp.concatenate([l['wq'] * scale, l['wk'], l['wv']], axis=1)  # (32,96)
        bqkv = jnp.concatenate([l['bq'] * scale, l['bk'], l['bv']], axis=1)  # (1,96)
        w_slab = w_slab.at[li, _W_QKV:_W_QKV + E, 0:3 * E].set(wqkv)
        w_slab = w_slab.at[li, _W_O:_W_O + E, 0:E].set(l['wo'])
        w_slab = w_slab.at[li, _W_1:_W_1 + E, 0:FF].set(l['w1'])
        w_slab = w_slab.at[li, _W_2:_W_2 + FF, 0:E].set(l['w2'])
        b_slab = b_slab.at[li, 0, 0:3 * E].set(bqkv[0])
        b_slab = b_slab.at[li, 1, 0:E].set(l['bo'][0])
        b_slab = b_slab.at[li, 2, 0:E].set(l['g1'][0])
        b_slab = b_slab.at[li, 3, 0:E].set(l['be1'][0])
        b_slab = b_slab.at[li, 4, 0:FF].set(l['b1'][0])
        b_slab = b_slab.at[li, 5, 0:E].set(l['b2'][0])
        b_slab = b_slab.at[li, 6, 0:E].set(l['g2'][0])
        b_slab = b_slab.at[li, 7, 0:E].set(l['be2'][0])

    return {'emb': emb, 'w': w_slab.astype(jnp.bfloat16), 'b': b_slab}


# --------------------------------------------------------------------------
# Forward wrapper: just the fused pallas_call (plus free reshapes)
# --------------------------------------------------------------------------
def bert_forward(prep, token_ids, mask):
    # TODO(synk): the reference's `mask=` kwarg is invalid for
    # nn.MultiheadAttention, so the mask is a no-op there; ignored here too.
    del mask
    N, S = token_ids.shape
    tok = token_ids.reshape(N * S, 1).astype(jnp.int32)      # rows in (n, s) order

    vmem = pl.BlockSpec(memory_space=pltpu.MemorySpace.VMEM)
    flat = pl.pallas_call(
        bert_encoder_kernel,
        out_shape=jax.ShapeDtypeStruct((N * S, EMBED_DIM), jnp.float32),
        in_specs=[vmem, vmem, vmem, vmem],
        out_specs=vmem,
    )(tok, prep['emb'], prep['w'], prep['b'])

    # rows are already (n, s)-ordered: this reshape is free (no transpose).
    return flat.reshape(N, S, EMBED_DIM)


# --------------------------------------------------------------------------
# Pure-JAX reference (mirrors the kernel's bf16 matmul-operand precision)
# --------------------------------------------------------------------------
def _layernorm(x, g, b):
    mu = jnp.mean(x, axis=-1, keepdims=True)
    var = jnp.mean((x - mu) ** 2, axis=-1, keepdims=True)
    return (x - mu) / jnp.sqrt(var + LN_EPS) * g + b


def transformer_block_ref(x, p):
    """x: (A, B, E); attention over axis A, batched over B (PyTorch MHA default)."""
    A, B, E = x.shape
    bf16 = jnp.bfloat16
    bw = lambda w: w.astype(bf16)
    x2 = x.reshape(A * B, E)
    xb = x2.astype(bf16)
    q = (jnp.dot(xb, bw(p['wq']), preferred_element_type=jnp.float32)
         + p['bq']) * (1.0 / math.sqrt(HEAD_DIM))
    k = jnp.dot(xb, bw(p['wk']), preferred_element_type=jnp.float32) + p['bk']
    v = jnp.dot(xb, bw(p['wv']), preferred_element_type=jnp.float32) + p['bv']
    q4 = q.reshape(A, B, HEADS, HEAD_DIM)
    k4 = k.reshape(A, B, HEADS, HEAD_DIM)
    v4 = v.reshape(A, B, HEADS, HEAD_DIM)
    sc = jnp.einsum('abhd,cbhd->bhac', q4.astype(bf16), k4.astype(bf16),
                    preferred_element_type=jnp.float32)
    w = jax.nn.softmax(sc, axis=-1)
    o = jnp.einsum('bhac,cbhd->abhd', w.astype(bf16), v4.astype(bf16),
                   preferred_element_type=jnp.float32).reshape(A * B, E)
    attn = jnp.dot(o.astype(bf16), bw(p['wo']),
                   preferred_element_type=jnp.float32) + p['bo']
    y = _layernorm(attn + x2, p['g1'], p['be1'])
    h1 = jnp.maximum(jnp.dot(y.astype(bf16), bw(p['w1']),
                             preferred_element_type=jnp.float32) + p['b1'], 0.0)
    ff = jnp.dot(h1.astype(bf16), bw(p['w2']),
                 preferred_element_type=jnp.float32) + p['b2']
    z = _layernorm(ff + y, p['g2'], p['be2'])
    return z.reshape(A, B, E)


def bert_forward_ref(params, token_ids):
    N, S = token_ids.shape
    word = jnp.take(params['word_embedding'], token_ids, axis=0)
    pos = jnp.take(params['position_embedding'], jnp.arange(S), axis=0)
    out = word + pos[None, :, :]
    for layer in params['layers']:
        out = transformer_block_ref(out, layer)
    return out


# --------------------------------------------------------------------------
# Deterministic parameter init (shapes follow the PyTorch module __init__)
# --------------------------------------------------------------------------
def init_params(key):
    def rnd(k, shape, scale=0.02):
        return (scale * jax.random.normal(k, shape)).astype(jnp.float32)

    keys = jax.random.split(key, 2 + NUM_LAYERS)
    params = {
        'word_embedding': rnd(keys[0], (SRC_VOCAB_SIZE, EMBED_DIM), 1.0),
        'position_embedding': rnd(keys[1], (MAX_LENGTH, EMBED_DIM), 1.0),
        'layers': [],
    }
    for li in range(NUM_LAYERS):
        lk = jax.random.split(keys[2 + li], 12)
        layer = {
            # all weights stored in (in, out) layout (PyTorch Linear weight.T)
            'wq': rnd(lk[0], (EMBED_DIM, EMBED_DIM)),
            'wk': rnd(lk[1], (EMBED_DIM, EMBED_DIM)),
            'wv': rnd(lk[2], (EMBED_DIM, EMBED_DIM)),
            'bq': rnd(lk[3], (1, EMBED_DIM)),
            'bk': rnd(lk[4], (1, EMBED_DIM)),
            'bv': rnd(lk[5], (1, EMBED_DIM)),
            'wo': rnd(lk[6], (EMBED_DIM, EMBED_DIM)),
            'bo': rnd(lk[7], (1, EMBED_DIM)),
            'g1': jnp.ones((1, EMBED_DIM), jnp.float32),
            'be1': rnd(lk[8], (1, EMBED_DIM)),
            'w1': rnd(lk[9], (EMBED_DIM, FF_DIM)),
            'b1': rnd(lk[10], (1, FF_DIM)),
            'w2': rnd(lk[11], (FF_DIM, EMBED_DIM)),
            'b2': jnp.zeros((1, EMBED_DIM), jnp.float32),
            'g2': jnp.ones((1, EMBED_DIM), jnp.float32),
            'be2': jnp.zeros((1, EMBED_DIM), jnp.float32),
        }
        params['layers'].append(layer)
    return params


if __name__ == "__main__":
    key = jax.random.PRNGKey(0)
    pkey, xkey = jax.random.split(key)
    params = init_params(pkey)
    prep = prepare_params(params)          # one-time packing, outside the jit path

    token_ids = jax.random.randint(xkey, (BATCH, SEQ), 0, SRC_VOCAB_SIZE,
                                   dtype=jnp.int32)
    mask = jnp.ones((BATCH, SEQ), dtype=jnp.int32)

    fwd = jax.jit(bert_forward)
    out = jax.block_until_ready(fwd(prep, token_ids, mask))

    assert out.shape == (BATCH, SEQ, EMBED_DIM)
    ref = bert_forward_ref(params, token_ids)
    max_err = float(jnp.max(jnp.abs(out - ref)))
    # bf16 MXU operands are mirrored in the reference; the remaining delta is
    # the approx-reciprocal softmax + scale-folding rounding, well under 5e-3.
    assert jnp.allclose(out, ref, atol=5e-3, rtol=5e-3), max_err

    print("KERNEL_OK")
</pallas_src>

<mosaic_0001>
module attributes {stable_mosaic.version = 11 : i64} {
  func.func @bert_encoder_kernel(%arg0: memref<16x1xi32, #tpu.memory_space<vmem>>, %arg1: memref<80x32xf32, #tpu.memory_space<vmem>>, %arg2: memref<2x224x128xbf16, #tpu.memory_space<vmem>>, %arg3: memref<2x8x128xf32, #tpu.memory_space<vmem>>, %arg4: memref<16x32xf32, #tpu.memory_space<vmem>>) attributes {dimension_semantics = [], scalar_prefetch = 0 : i64, scratch_operands = 0 : i64, tpu.core_type = #tpu.core_type<tc>} {
    %c0 = arith.constant 0 : index
    %c0_0 = arith.constant 0 : index
    %0 = vector.load %arg0[%c0, %c0_0] : memref<16x1xi32, #tpu.memory_space<vmem>>, vector<16x1xi32>
    %1 = tpu.iota {dimensions = array<i32: 1>} : vector<16x64xi32>
    %2 = vector.broadcast %0 : vector<16x1xi32> to vector<16x64xi32>
    %3 = arith.cmpi eq, %1, %2 : vector<16x64xi32>
    %4 = arith.extui %3 : vector<16x64xi1> to vector<16x64xi32>
    %5 = arith.sitofp %4 : vector<16x64xi32> to vector<16x64xf32>
    %c0_1 = arith.constant 0 : index
    %c0_2 = arith.constant 0 : index
    %6 = vector.load %arg1[%c0_1, %c0_2] : memref<80x32xf32, #tpu.memory_space<vmem>>, vector<64x32xf32>
    %cst = arith.constant dense<0.000000e+00> : vector<16x32xf32>
    %7 = tpu.matmul %5, %6, %cst {dimension_numbers = #tpu.dot_dimension_numbers<[1], [0], [0], [1], [0, 0, 1, 1], [], []>} : vector<16x64xf32>, vector<64x32xf32>, vector<16x32xf32> -> vector<16x32xf32>
    %c64 = arith.constant 64 : index
    %c0_3 = arith.constant 0 : index
    %8 = vector.load %arg1[%c64, %c0_3] : memref<80x32xf32, #tpu.memory_space<vmem>>, vector<16x32xf32>
    %9 = arith.addf %7, %8 : vector<16x32xf32>
    %10 = tpu.iota {dimensions = array<i32: 0>} : vector<16x16xi32>
    %11 = tpu.iota {dimensions = array<i32: 1>} : vector<16x16xi32>
    %c8_i32 = arith.constant 8 : i32
    %c0_i32 = arith.constant 0 : i32
    %12 = arith.cmpi eq, %c8_i32, %c0_i32 : i32
    %c1_i32 = arith.constant 1 : i32
    %13 = arith.select %12, %c1_i32, %c8_i32 : i32
    %14 = vector.broadcast %13 : i32 to vector<16x16xi32>
    %15 = arith.remsi %10, %14 : vector<16x16xi32>
    %c0_i32_4 = arith.constant 0 : i32
    %16 = vector.broadcast %c0_i32_4 : i32 to vector<16x16xi32>
    %17 = arith.cmpi ne, %15, %16 : vector<16x16xi32>
    %c0_i32_5 = arith.constant 0 : i32
    %18 = vector.broadcast %c0_i32_5 : i32 to vector<16x16xi32>
    %19 = arith.cmpi slt, %15, %18 : vector<16x16xi32>
    %c0_i32_6 = arith.constant 0 : i32
    %20 = arith.cmpi slt, %13, %c0_i32_6 : i32
    %21 = vector.broadcast %20 : i1 to vector<16x16xi1>
    %22 = vector.broadcast %21 : vector<16x16xi1> to vector<16x16xi1>
    %23 = arith.xori %19, %22 : vector<16x16xi1>
    %24 = arith.andi %23, %17 : vector<16x16xi1>
    %25 = vector.broadcast %13 : i32 to vector<16x16xi32>
    %26 = arith.addi %15, %25 : vector<16x16xi32>
    %27 = arith.select %24, %26, %15 : vector<16x16xi1>, vector<16x16xi32>
    %c8_i32_7 = arith.constant 8 : i32
    %c0_i32_8 = arith.constant 0 : i32
    %28 = arith.cmpi eq, %c8_i32_7, %c0_i32_8 : i32
    %c1_i32_9 = arith.constant 1 : i32
    %29 = arith.select %28, %c1_i32_9, %c8_i32_7 : i32
    %30 = vector.broadcast %29 : i32 to vector<16x16xi32>
    %31 = arith.remsi %11, %30 : vector<16x16xi32>
    %c0_i32_10 = arith.constant 0 : i32
    %32 = vector.broadcast %c0_i32_10 : i32 to vector<16x16xi32>
    %33 = arith.cmpi ne, %31, %32 : vector<16x16xi32>
    %c0_i32_11 = arith.constant 0 : i32
    %34 = vector.broadcast %c0_i32_11 : i32 to vector<16x16xi32>
    %35 = arith.cmpi slt, %31, %34 : vector<16x16xi32>
    %c0_i32_12 = arith.constant 0 : i32
    %36 = arith.cmpi slt, %29, %c0_i32_12 : i32
    %37 = vector.broadcast %36 : i1 to vector<16x16xi1>
    %38 = vector.broadcast %37 : vector<16x16xi1> to vector<16x16xi1>
    %39 = arith.xori %35, %38 : vector<16x16xi1>
    %40 = arith.andi %39, %33 : vector<16x16xi1>
    %41 = vector.broadcast %29 : i32 to vector<16x16xi32>
    %42 = arith.addi %31, %41 : vector<16x16xi32>
    %43 = arith.select %40, %42, %31 : vector<16x16xi1>, vector<16x16xi32>
    %44 = arith.cmpi eq, %27, %43 : vector<16x16xi32>
    %c0_13 = arith.constant 0 : index
    %c0_14 = arith.constant 0 : index
    %c0_15 = arith.constant 0 : index
    %45 = vector.load %arg3[%c0_13, %c0_14, %c0_15] : memref<2x8x128xf32, #tpu.memory_space<vmem>>, vector<1x8x128xf32>
    %46 = vector.shape_cast %45 : vector<1x8x128xf32> to vector<8x128xf32>
    %47 = arith.truncf %9 : vector<16x32xf32> to vector<16x32xbf16>
    %c0_i32_16 = arith.constant 0 : i32
    %c0_i32_17 = arith.constant 0 : i32
    %c0_i32_18 = arith.constant 0 : i32
    %48 = tpu.memref_slice %arg2[%c0_i32_16, %c0_i32_17, %c0_i32_18] : memref<2x224x128xbf16, #tpu.memory_space<vmem>> -> memref<1x224x128xbf16, #tpu.memory_space<vmem>>
    %49 = tpu.memref_squeeze %48 : memref<1x224x128xbf16, #tpu.memory_space<vmem>> -> memref<224x128xbf16, #tpu.memory_space<vmem>>
    %c0_19 = arith.constant 0 : index
    %c0_20 = arith.constant 0 : index
    %50 = vector.load %49[%c0_19, %c0_20] : memref<224x128xbf16, #tpu.memory_space<vmem>>, vector<32x96xbf16>
    %cst_21 = arith.constant dense<0.000000e+00> : vector<16x96xf32>
    %51 = tpu.matmul %47, %50, %cst_21 {dimension_numbers = #tpu.dot_dimension_numbers<[1], [0], [0], [1], [0, 0, 1, 1], [], []>} : vector<16x32xbf16>, vector<32x96xbf16>, vector<16x96xf32> -> vector<16x96xf32>
    %52 = vector.extract_strided_slice %46 {offsets = [0, 0], sizes = [1, 96], strides = [1, 1]} : vector<8x128xf32> to vector<1x96xf32>
    %53 = vector.broadcast %52 : vector<1x96xf32> to vector<16x96xf32>
    %54 = arith.addf %51, %53 : vector<16x96xf32>
    %55 = vector.extract_strided_slice %54 {offsets = [0, 0], sizes = [16, 32], strides = [1, 1]} : vector<16x96xf32> to vector<16x32xf32>
    %56 = vector.extract_strided_slice %54 {offsets = [0, 32], sizes = [16, 32], strides = [1, 1]} : vector<16x96xf32> to vector<16x32xf32>
    %57 = vector.extract_strided_slice %54 {offsets = [0, 64], sizes = [16, 32], strides = [1, 1]} : vector<16x96xf32> to vector<16x32xf32>
    %58 = vector.extract_strided_slice %55 {offsets = [0, 0], sizes = [16, 8], strides = [1, 1]} : vector<16x32xf32> to vector<16x8xf32>
    %59 = arith.truncf %58 : vector<16x8xf32> to vector<16x8xbf16>
    %60 = vector.extract_strided_slice %56 {offsets = [0, 0], sizes = [16, 8], strides = [1, 1]} : vector<16x32xf32> to vector<16x8xf32>
    %61 = arith.truncf %60 : vector<16x8xf32> to vector<16x8xbf16>
    %62 = vector.extract_strided_slice %57 {offsets = [0, 0], sizes = [16, 8], strides = [1, 1]} : vector<16x32xf32> to vector<16x8xf32>
    %63 = arith.truncf %62 : vector<16x8xf32> to vector<16x8xbf16>
    %cst_22 = arith.constant dense<0.000000e+00> : vector<16x16xf32>
    %64 = tpu.matmul %59, %61, %cst_22 {dimension_numbers = #tpu.dot_dimension_numbers<[1], [1], [0], [0], [0, 0, 1, 0], [], []>} : vector<16x8xbf16>, vector<16x8xbf16>, vector<16x16xf32> -> vector<16x16xf32>
    %cst_23 = arith.constant -1.000000e+30 : f32
    %65 = vector.broadcast %cst_23 : f32 to vector<16x16xf32>
    %66 = arith.select %44, %64, %65 : vector<16x16xi1>, vector<16x16xf32>
    %cst_24 = arith.constant dense<0xFF800000> : vector<16xf32>
    %67 = vector.multi_reduction <maximumf>, %66, %cst_24 [1] : vector<16x16xf32> to vector<16xf32>
    %68 = vector.shape_cast %67 : vector<16xf32> to vector<16x1xf32>
    %69 = vector.broadcast %68 : vector<16x1xf32> to vector<16x16xf32>
    %70 = arith.subf %66, %69 : vector<16x16xf32>
    %71 = math.exp %70 : vector<16x16xf32>
    %cst_25 = arith.constant dense<0.000000e+00> : vector<16xf32>
    %72 = vector.multi_reduction <add>, %71, %cst_25 [1] : vector<16x16xf32> to vector<16xf32>
    %73 = vector.shape_cast %72 : vector<16xf32> to vector<16x1xf32>
    %74 = tpu.reciprocal %73 {approx = true} : vector<16x1xf32> -> vector<16x1xf32>
    %75 = vector.broadcast %74 : vector<16x1xf32> to vector<16x16xf32>
    %76 = arith.mulf %71, %75 : vector<16x16xf32>
    %77 = arith.truncf %76 : vector<16x16xf32> to vector<16x16xbf16>
    %cst_26 = arith.constant dense<0.000000e+00> : vector<16x8xf32>
    %78 = tpu.matmul %77, %63, %cst_26 {dimension_numbers = #tpu.dot_dimension_numbers<[1], [0], [0], [1], [0, 0, 1, 1], [], []>} : vector<16x16xbf16>, vector<16x8xbf16>, vector<16x8xf32> -> vector<16x8xf32>
    %79 = vector.extract_strided_slice %55 {offsets = [0, 8], sizes = [16, 8], strides = [1, 1]} : vector<16x32xf32> to vector<16x8xf32>
    %80 = arith.truncf %79 : vector<16x8xf32> to vector<16x8xbf16>
    %81 = vector.extract_strided_slice %56 {offsets = [0, 8], sizes = [16, 8], strides = [1, 1]} : vector<16x32xf32> to vector<16x8xf32>
    %82 = arith.truncf %81 : vector<16x8xf32> to vector<16x8xbf16>
    %83 = vector.extract_strided_slice %57 {offsets = [0, 8], sizes = [16, 8], strides = [1, 1]} : vector<16x32xf32> to vector<16x8xf32>
    %84 = arith.truncf %83 : vector<16x8xf32> to vector<16x8xbf16>
    %cst_27 = arith.constant dense<0.000000e+00> : vector<16x16xf32>
    %85 = tpu.matmul %80, %82, %cst_27 {dimension_numbers = #tpu.dot_dimension_numbers<[1], [1], [0], [0], [0, 0, 1, 0], [], []>} : vector<16x8xbf16>, vector<16x8xbf16>, vector<16x16xf32> -> vector<16x16xf32>
    %cst_28 = arith.constant -1.000000e+30 : f32
    %86 = vector.broadcast %cst_28 : f32 to vector<16x16xf32>
    %87 = arith.select %44, %85, %86 : vector<16x16xi1>, vector<16x16xf32>
    %cst_29 = arith.constant dense<0xFF800000> : vector<16xf32>
    %88 = vector.multi_reduction <maximumf>, %87, %cst_29 [1] : vector<16x16xf32> to vector<16xf32>
    %89 = vector.shape_cast %88 : vector<16xf32> to vector<16x1xf32>
    %90 = vector.broadcast %89 : vector<16x1xf32> to vector<16x16xf32>
    %91 = arith.subf %87, %90 : vector<16x16xf32>
    %92 = math.exp %91 : vector<16x16xf32>
    %cst_30 = arith.constant dense<0.000000e+00> : vector<16xf32>
    %93 = vector.multi_reduction <add>, %92, %cst_30 [1] : vector<16x16xf32> to vector<16xf32>
    %94 = vector.shape_cast %93 : vector<16xf32> to vector<16x1xf32>
    %95 = tpu.reciprocal %94 {approx = true} : vector<16x1xf32> -> vector<16x1xf32>
    %96 = vector.broadcast %95 : vector<16x1xf32> to vector<16x16xf32>
    %97 = arith.mulf %92, %96 : vector<16x16xf32>
    %98 = arith.truncf %97 : vector<16x16xf32> to vector<16x16xbf16>
    %cst_31 = arith.constant dense<0.000000e+00> : vector<16x8xf32>
    %99 = tpu.matmul %98, %84, %cst_31 {dimension_numbers = #tpu.dot_dimension_numbers<[1], [0], [0], [1], [0, 0, 1, 1], [], []>} : vector<16x16xbf16>, vector<16x8xbf16>, vector<16x8xf32> -> vector<16x8xf32>
    %100 = vector.extract_strided_slice %55 {offsets = [0, 16], sizes = [16, 8], strides = [1, 1]} : vector<16x32xf32> to vector<16x8xf32>
    %101 = arith.truncf %100 : vector<16x8xf32> to vector<16x8xbf16>
    %102 = vector.extract_strided_slice %56 {offsets = [0, 16], sizes = [16, 8], strides = [1, 1]} : vector<16x32xf32> to vector<16x8xf32>
    %103 = arith.truncf %102 : vector<16x8xf32> to vector<16x8xbf16>
    %104 = vector.extract_strided_slice %57 {offsets = [0, 16], sizes = [16, 8], strides = [1, 1]} : vector<16x32xf32> to vector<16x8xf32>
    %105 = arith.truncf %104 : vector<16x8xf32> to vector<16x8xbf16>
    %cst_32 = arith.constant dense<0.000000e+00> : vector<16x16xf32>
    %106 = tpu.matmul %101, %103, %cst_32 {dimension_numbers = #tpu.dot_dimension_numbers<[1], [1], [0], [0], [0, 0, 1, 0], [], []>} : vector<16x8xbf16>, vector<16x8xbf16>, vector<16x16xf32> -> vector<16x16xf32>
    %cst_33 = arith.constant -1.000000e+30 : f32
    %107 = vector.broadcast %cst_33 : f32 to vector<16x16xf32>
    %108 = arith.select %44, %106, %107 : vector<16x16xi1>, vector<16x16xf32>
    %cst_34 = arith.constant dense<0xFF800000> : vector<16xf32>
    %109 = vector.multi_reduction <maximumf>, %108, %cst_34 [1] : vector<16x16xf32> to vector<16xf32>
    %110 = vector.shape_cast %109 : vector<16xf32> to vector<16x1xf32>
    %111 = vector.broadcast %110 : vector<16x1xf32> to vector<16x16xf32>
    %112 = arith.subf %108, %111 : vector<16x16xf32>
    %113 = math.exp %112 : vector<16x16xf32>
    %cst_35 = arith.constant dense<0.000000e+00> : vector<16xf32>
    %114 = vector.multi_reduction <add>, %113, %cst_35 [1] : vector<16x16xf32> to vector<16xf32>
    %115 = vector.shape_cast %114 : vector<16xf32> to vector<16x1xf32>
    %116 = tpu.reciprocal %115 {approx = true} : vector<16x1xf32> -> vector<16x1xf32>
    %117 = vector.broadcast %116 : vector<16x1xf32> to vector<16x16xf32>
    %118 = arith.mulf %113, %117 : vector<16x16xf32>
    %119 = arith.truncf %118 : vector<16x16xf32> to vector<16x16xbf16>
    %cst_36 = arith.constant dense<0.000000e+00> : vector<16x8xf32>
    %120 = tpu.matmul %119, %105, %cst_36 {dimension_numbers = #tpu.dot_dimension_numbers<[1], [0], [0], [1], [0, 0, 1, 1], [], []>} : vector<16x16xbf16>, vector<16x8xbf16>, vector<16x8xf32> -> vector<16x8xf32>
    %121 = vector.extract_strided_slice %55 {offsets = [0, 24], sizes = [16, 8], strides = [1, 1]} : vector<16x32xf32> to vector<16x8xf32>
    %122 = arith.truncf %121 : vector<16x8xf32> to vector<16x8xbf16>
    %123 = vector.extract_strided_slice %56 {offsets = [0, 24], sizes = [16, 8], strides = [1, 1]} : vector<16x32xf32> to vector<16x8xf32>
    %124 = arith.truncf %123 : vector<16x8xf32> to vector<16x8xbf16>
    %125 = vector.extract_strided_slice %57 {offsets = [0, 24], sizes = [16, 8], strides = [1, 1]} : vector<16x32xf32> to vector<16x8xf32>
    %126 = arith.truncf %125 : vector<16x8xf32> to vector<16x8xbf16>
    %cst_37 = arith.constant dense<0.000000e+00> : vector<16x16xf32>
    %127 = tpu.matmul %122, %124, %cst_37 {dimension_numbers = #tpu.dot_dimension_numbers<[1], [1], [0], [0], [0, 0, 1, 0], [], []>} : vector<16x8xbf16>, vector<16x8xbf16>, vector<16x16xf32> -> vector<16x16xf32>
    %cst_38 = arith.constant -1.000000e+30 : f32
    %128 = vector.broadcast %cst_38 : f32 to vector<16x16xf32>
    %129 = arith.select %44, %127, %128 : vector<16x16xi1>, vector<16x16xf32>
    %cst_39 = arith.constant dense<0xFF800000> : vector<16xf32>
    %130 = vector.multi_reduction <maximumf>, %129, %cst_39 [1] : vector<16x16xf32> to vector<16xf32>
    %131 = vector.shape_cast %130 : vector<16xf32> to vector<16x1xf32>
    %132 = vector.broadcast %131 : vector<16x1xf32> to vector<16x16xf32>
    %133 = arith.subf %129, %132 : vector<16x16xf32>
    %134 = math.exp %133 : vector<16x16xf32>
    %cst_40 = arith.constant dense<0.000000e+00> : vector<16xf32>
    %135 = vector.multi_reduction <add>, %134, %cst_40 [1] : vector<16x16xf32> to vector<16xf32>
    %136 = vector.shape_cast %135 : vector<16xf32> to vector<16x1xf32>
    %137 = tpu.reciprocal %136 {approx = true} : vector<16x1xf32> -> vector<16x1xf32>
    %138 = vector.broadcast %137 : vector<16x1xf32> to vector<16x16xf32>
    %139 = arith.mulf %134, %138 : vector<16x16xf32>
    %140 = arith.truncf %139 : vector<16x16xf32> to vector<16x16xbf16>
    %cst_41 = arith.constant dense<0.000000e+00> : vector<16x8xf32>
    %141 = tpu.matmul %140, %126, %cst_41 {dimension_numbers = #tpu.dot_dimension_numbers<[1], [0], [0], [1], [0, 0, 1, 1], [], []>} : vector<16x16xbf16>, vector<16x8xbf16>, vector<16x8xf32> -> vector<16x8xf32>
    %142 = tpu.concatenate %78, %99, %120, %141 in 1 : vector<16x8xf32>, vector<16x8xf32>, vector<16x8xf32>, vector<16x8xf32> -> vector<16x32xf32>
    %143 = arith.truncf %142 : vector<16x32xf32> to vector<16x32xbf16>
    %c0_i32_42 = arith.constant 0 : i32
    %c0_i32_43 = arith.constant 0 : i32
    %c0_i32_44 = arith.constant 0 : i32
    %144 = tpu.memref_slice %arg2[%c0_i32_42, %c0_i32_43, %c0_i32_44] : memref<2x224x128xbf16, #tpu.memory_space<vmem>> -> memref<1x224x128xbf16, #tpu.memory_space<vmem>>
    %145 = tpu.memref_squeeze %144 : memref<1x224x128xbf16, #tpu.memory_space<vmem>> -> memref<224x128xbf16, #tpu.memory_space<vmem>>
    %c32 = arith.constant 32 : index
    %c0_45 = arith.constant 0 : index
    %146 = vector.load %145[%c32, %c0_45] : memref<224x128xbf16, #tpu.memory_space<vmem>>, vector<32x32xbf16>
    %cst_46 = arith.constant dense<0.000000e+00> : vector<16x32xf32>
    %147 = tpu.matmul %143, %146, %cst_46 {dimension_numbers = #tpu.dot_dimension_numbers<[1], [0], [0], [1], [0, 0, 1, 1], [], []>} : vector<16x32xbf16>, vector<32x32xbf16>, vector<16x32xf32> -> vector<16x32xf32>
    %148 = vector.extract_strided_slice %46 {offsets = [1, 0], sizes = [1, 32], strides = [1, 1]} : vector<8x128xf32> to vector<1x32xf32>
    %149 = vector.broadcast %148 : vector<1x32xf32> to vector<16x32xf32>
    %150 = arith.addf %147, %149 : vector<16x32xf32>
    %151 = arith.addf %150, %9 : vector<16x32xf32>
    %152 = vector.extract_strided_slice %46 {offsets = [2, 0], sizes = [1, 32], strides = [1, 1]} : vector<8x128xf32> to vector<1x32xf32>
    %153 = vector.extract_strided_slice %46 {offsets = [3, 0], sizes = [1, 32], strides = [1, 1]} : vector<8x128xf32> to vector<1x32xf32>
    %cst_47 = arith.constant dense<0.000000e+00> : vector<16xf32>
    %154 = vector.multi_reduction <add>, %151, %cst_47 [1] : vector<16x32xf32> to vector<16xf32>
    %155 = vector.shape_cast %154 : vector<16xf32> to vector<16x1xf32>
    %cst_48 = arith.constant 3.200000e+01 : f32
    %156 = vector.broadcast %cst_48 : f32 to vector<16x1xf32>
    %157 = arith.divf %155, %156 : vector<16x1xf32>
    %158 = vector.broadcast %157 : vector<16x1xf32> to vector<16x32xf32>
    %159 = arith.subf %151, %158 : vector<16x32xf32>
    %160 = arith.mulf %159, %159 : vector<16x32xf32>
    %cst_49 = arith.constant dense<0.000000e+00> : vector<16xf32>
    %161 = vector.multi_reduction <add>, %160, %cst_49 [1] : vector<16x32xf32> to vector<16xf32>
    %162 = vector.shape_cast %161 : vector<16xf32> to vector<16x1xf32>
    %cst_50 = arith.constant 3.200000e+01 : f32
    %163 = vector.broadcast %cst_50 : f32 to vector<16x1xf32>
    %164 = arith.divf %162, %163 : vector<16x1xf32>
    %165 = vector.broadcast %157 : vector<16x1xf32> to vector<16x32xf32>
    %166 = arith.subf %151, %165 : vector<16x32xf32>
    %cst_51 = arith.constant 9.99999974E-6 : f32
    %167 = vector.broadcast %cst_51 : f32 to vector<16x1xf32>
    %168 = arith.addf %164, %167 : vector<16x1xf32>
    %169 = math.rsqrt %168 : vector<16x1xf32>
    %170 = vector.broadcast %169 : vector<16x1xf32> to vector<16x32xf32>
    %171 = arith.mulf %166, %170 : vector<16x32xf32>
    %172 = vector.broadcast %152 : vector<1x32xf32> to vector<16x32xf32>
    %173 = arith.mulf %171, %172 : vector<16x32xf32>
    %174 = vector.broadcast %153 : vector<1x32xf32> to vector<16x32xf32>
    %175 = arith.addf %173, %174 : vector<16x32xf32>
    %176 = arith.truncf %175 : vector<16x32xf32> to vector<16x32xbf16>
    %c0_i32_52 = arith.constant 0 : i32
    %c0_i32_53 = arith.constant 0 : i32
    %c0_i32_54 = arith.constant 0 : i32
    %177 = tpu.memref_slice %arg2[%c0_i32_52, %c0_i32_53, %c0_i32_54] : memref<2x224x128xbf16, #tpu.memory_space<vmem>> -> memref<1x224x128xbf16, #tpu.memory_space<vmem>>
    %178 = tpu.memref_squeeze %177 : memref<1x224x128xbf16, #tpu.memory_space<vmem>> -> memref<224x128xbf16, #tpu.memory_space<vmem>>
    %c64_55 = arith.constant 64 : index
    %c0_56 = arith.constant 0 : index
    %179 = vector.load %178[%c64_55, %c0_56] : memref<224x128xbf16, #tpu.memory_space<vmem>>, vector<32x128xbf16>
    %cst_57 = arith.constant dense<0.000000e+00> : vector<16x128xf32>
    %180 = tpu.matmul %176, %179, %cst_57 {dimension_numbers = #tpu.dot_dimension_numbers<[1], [0], [0], [1], [0, 0, 1, 1], [], []>} : vector<16x32xbf16>, vector<32x128xbf16>, vector<16x128xf32> -> vector<16x128xf32>
    %181 = vector.extract_strided_slice %46 {offsets = [4, 0], sizes = [1, 128], strides = [1, 1]} : vector<8x128xf32> to vector<1x128xf32>
    %182 = vector.broadcast %181 : vector<1x128xf32> to vector<16x128xf32>
    %183 = arith.addf %180, %182 : vector<16x128xf32>
    %cst_58 = arith.constant 0.000000e+00 : f32
    %184 = vector.broadcast %cst_58 : f32 to vector<16x128xf32>
    %185 = arith.maximumf %183, %184 : vector<16x128xf32>
    %186 = arith.truncf %185 : vector<16x128xf32> to vector<16x128xbf16>
    %c0_i32_59 = arith.constant 0 : i32
    %c0_i32_60 = arith.constant 0 : i32
    %c0_i32_61 = arith.constant 0 : i32
    %187 = tpu.memref_slice %arg2[%c0_i32_59, %c0_i32_60, %c0_i32_61] : memref<2x224x128xbf16, #tpu.memory_space<vmem>> -> memref<1x224x128xbf16, #tpu.memory_space<vmem>>
    %188 = tpu.memref_squeeze %187 : memref<1x224x128xbf16, #tpu.memory_space<vmem>> -> memref<224x128xbf16, #tpu.memory_space<vmem>>
    %c96 = arith.constant 96 : index
    %c0_62 = arith.constant 0 : index
    %189 = vector.load %188[%c96, %c0_62] : memref<224x128xbf16, #tpu.memory_space<vmem>>, vector<128x32xbf16>
    %cst_63 = arith.constant dense<0.000000e+00> : vector<16x32xf32>
    %190 = tpu.matmul %186, %189, %cst_63 {dimension_numbers = #tpu.dot_dimension_numbers<[1], [0], [0], [1], [0, 0, 1, 1], [], []>} : vector<16x128xbf16>, vector<128x32xbf16>, vector<16x32xf32> -> vector<16x32xf32>
    %191 = vector.extract_strided_slice %46 {offsets = [5, 0], sizes = [1, 32], strides = [1, 1]} : vector<8x128xf32> to vector<1x32xf32>
    %192 = vector.broadcast %191 : vector<1x32xf32> to vector<16x32xf32>
    %193 = arith.addf %190, %192 : vector<16x32xf32>
    %194 = arith.addf %193, %175 : vector<16x32xf32>
    %195 = vector.extract_strided_slice %46 {offsets = [6, 0], sizes = [1, 32], strides = [1, 1]} : vector<8x128xf32> to vector<1x32xf32>
    %196 = vector.extract_strided_slice %46 {offsets = [7, 0], sizes = [1, 32], strides = [1, 1]} : vector<8x128xf32> to vector<1x32xf32>
    %cst_64 = arith.constant dense<0.000000e+00> : vector<16xf32>
    %197 = vector.multi_reduction <add>, %194, %cst_64 [1] : vector<16x32xf32> to vector<16xf32>
    %198 = vector.shape_cast %197 : vector<16xf32> to vector<16x1xf32>
    %cst_65 = arith.constant 3.200000e+01 : f32
    %199 = vector.broadcast %cst_65 : f32 to vector<16x1xf32>
    %200 = arith.divf %198, %199 : vector<16x1xf32>
    %201 = vector.broadcast %200 : vector<16x1xf32> to vector<16x32xf32>
    %202 = arith.subf %194, %201 : vector<16x32xf32>
    %203 = arith.mulf %202, %202 : vector<16x32xf32>
    %cst_66 = arith.constant dense<0.000000e+00> : vector<16xf32>
    %204 = vector.multi_reduction <add>, %203, %cst_66 [1] : vector<16x32xf32> to vector<16xf32>
    %205 = vector.shape_cast %204 : vector<16xf32> to vector<16x1xf32>
    %cst_67 = arith.constant 3.200000e+01 : f32
    %206 = vector.broadcast %cst_67 : f32 to vector<16x1xf32>
    %207 = arith.divf %205, %206 : vector<16x1xf32>
    %208 = vector.broadcast %200 : vector<16x1xf32> to vector<16x32xf32>
    %209 = arith.subf %194, %208 : vector<16x32xf32>
    %cst_68 = arith.constant 9.99999974E-6 : f32
    %210 = vector.broadcast %cst_68 : f32 to vector<16x1xf32>
    %211 = arith.addf %207, %210 : vector<16x1xf32>
    %212 = math.rsqrt %211 : vector<16x1xf32>
    %213 = vector.broadcast %212 : vector<16x1xf32> to vector<16x32xf32>
    %214 = arith.mulf %209, %213 : vector<16x32xf32>
    %215 = vector.broadcast %195 : vector<1x32xf32> to vector<16x32xf32>
    %216 = arith.mulf %214, %215 : vector<16x32xf32>
    %217 = vector.broadcast %196 : vector<1x32xf32> to vector<16x32xf32>
    %218 = arith.addf %216, %217 : vector<16x32xf32>
    %c1 = arith.constant 1 : index
    %c0_69 = arith.constant 0 : index
    %c0_70 = arith.constant 0 : index
    %219 = vector.load %arg3[%c1, %c0_69, %c0_70] : memref<2x8x128xf32, #tpu.memory_space<vmem>>, vector<1x8x128xf32>
    %220 = vector.shape_cast %219 : vector<1x8x128xf32> to vector<8x128xf32>
    %221 = arith.truncf %218 : vector<16x32xf32> to vector<16x32xbf16>
    %c1_i32_71 = arith.constant 1 : i32
    %c0_i32_72 = arith.constant 0 : i32
    %c0_i32_73 = arith.constant 0 : i32
    %222 = tpu.memref_slice %arg2[%c1_i32_71, %c0_i32_72, %c0_i32_73] : memref<2x224x128xbf16, #tpu.memory_space<vmem>> -> memref<1x224x128xbf16, #tpu.memory_space<vmem>>
    %223 = tpu.memref_squeeze %222 : memref<1x224x128xbf16, #tpu.memory_space<vmem>> -> memref<224x128xbf16, #tpu.memory_space<vmem>>
    %c0_74 = arith.constant 0 : index
    %c0_75 = arith.constant 0 : index
    %224 = vector.load %223[%c0_74, %c0_75] : memref<224x128xbf16, #tpu.memory_space<vmem>>, vector<32x96xbf16>
    %cst_76 = arith.constant dense<0.000000e+00> : vector<16x96xf32>
    %225 = tpu.matmul %221, %224, %cst_76 {dimension_numbers = #tpu.dot_dimension_numbers<[1], [0], [0], [1], [0, 0, 1, 1], [], []>} : vector<16x32xbf16>, vector<32x96xbf16>, vector<16x96xf32> -> vector<16x96xf32>
    %226 = vector.extract_strided_slice %220 {offsets = [0, 0], sizes = [1, 96], strides = [1, 1]} : vector<8x128xf32> to vector<1x96xf32>
    %227 = vector.broadcast %226 : vector<1x96xf32> to vector<16x96xf32>
    %228 = arith.addf %225, %227 : vector<16x96xf32>
    %229 = vector.extract_strided_slice %228 {offsets = [0, 0], sizes = [16, 32], strides = [1, 1]} : vector<16x96xf32> to vector<16x32xf32>
    %230 = vector.extract_strided_slice %228 {offsets = [0, 32], sizes = [16, 32], strides = [1, 1]} : vector<16x96xf32> to vector<16x32xf32>
    %231 = vector.extract_strided_slice %228 {offsets = [0, 64], sizes = [16, 32], strides = [1, 1]} : vector<16x96xf32> to vector<16x32xf32>
    %232 = vector.extract_strided_slice %229 {offsets = [0, 0], sizes = [16, 8], strides = [1, 1]} : vector<16x32xf32> to vector<16x8xf32>
    %233 = arith.truncf %232 : vector<16x8xf32> to vector<16x8xbf16>
    %234 = vector.extract_strided_slice %230 {offsets = [0, 0], sizes = [16, 8], strides = [1, 1]} : vector<16x32xf32> to vector<16x8xf32>
    %235 = arith.truncf %234 : vector<16x8xf32> to vector<16x8xbf16>
    %236 = vector.extract_strided_slice %231 {offsets = [0, 0], sizes = [16, 8], strides = [1, 1]} : vector<16x32xf32> to vector<16x8xf32>
    %237 = arith.truncf %236 : vector<16x8xf32> to vector<16x8xbf16>
    %cst_77 = arith.constant dense<0.000000e+00> : vector<16x16xf32>
    %238 = tpu.matmul %233, %235, %cst_77 {dimension_numbers = #tpu.dot_dimension_numbers<[1], [1], [0], [0], [0, 0, 1, 0], [], []>} : vector<16x8xbf16>, vector<16x8xbf16>, vector<16x16xf32> -> vector<16x16xf32>
    %cst_78 = arith.constant -1.000000e+30 : f32
    %239 = vector.broadcast %cst_78 : f32 to vector<16x16xf32>
    %240 = arith.select %44, %238, %239 : vector<16x16xi1>, vector<16x16xf32>
    %cst_79 = arith.constant dense<0xFF800000> : vector<16xf32>
    %241 = vector.multi_reduction <maximumf>, %240, %cst_79 [1] : vector<16x16xf32> to vector<16xf32>
    %242 = vector.shape_cast %241 : vector<16xf32> to vector<16x1xf32>
    %243 = vector.broadcast %242 : vector<16x1xf32> to vector<16x16xf32>
    %244 = arith.subf %240, %243 : vector<16x16xf32>
    %245 = math.exp %244 : vector<16x16xf32>
    %cst_80 = arith.constant dense<0.000000e+00> : vector<16xf32>
    %246 = vector.multi_reduction <add>, %245, %cst_80 [1] : vector<16x16xf32> to vector<16xf32>
    %247 = vector.shape_cast %246 : vector<16xf32> to vector<16x1xf32>
    %248 = tpu.reciprocal %247 {approx = true} : vector<16x1xf32> -> vector<16x1xf32>
    %249 = vector.broadcast %248 : vector<16x1xf32> to vector<16x16xf32>
    %250 = arith.mulf %245, %249 : vector<16x16xf32>
    %251 = arith.truncf %250 : vector<16x16xf32> to vector<16x16xbf16>
    %cst_81 = arith.constant dense<0.000000e+00> : vector<16x8xf32>
    %252 = tpu.matmul %251, %237, %cst_81 {dimension_numbers = #tpu.dot_dimension_numbers<[1], [0], [0], [1], [0, 0, 1, 1], [], []>} : vector<16x16xbf16>, vector<16x8xbf16>, vector<16x8xf32> -> vector<16x8xf32>
    %253 = vector.extract_strided_slice %229 {offsets = [0, 8], sizes = [16, 8], strides = [1, 1]} : vector<16x32xf32> to vector<16x8xf32>
    %254 = arith.truncf %253 : vector<16x8xf32> to vector<16x8xbf16>
    %255 = vector.extract_strided_slice %230 {offsets = [0, 8], sizes = [16, 8], strides = [1, 1]} : vector<16x32xf32> to vector<16x8xf32>
    %256 = arith.truncf %255 : vector<16x8xf32> to vector<16x8xbf16>
    %257 = vector.extract_strided_slice %231 {offsets = [0, 8], sizes = [16, 8], strides = [1, 1]} : vector<16x32xf32> to vector<16x8xf32>
    %258 = arith.truncf %257 : vector<16x8xf32> to vector<16x8xbf16>
    %cst_82 = arith.constant dense<0.000000e+00> : vector<16x16xf32>
    %259 = tpu.matmul %254, %256, %cst_82 {dimension_numbers = #tpu.dot_dimension_numbers<[1], [1], [0], [0], [0, 0, 1, 0], [], []>} : vector<16x8xbf16>, vector<16x8xbf16>, vector<16x16xf32> -> vector<16x16xf32>
    %cst_83 = arith.constant -1.000000e+30 : f32
    %260 = vector.broadcast %cst_83 : f32 to vector<16x16xf32>
    %261 = arith.select %44, %259, %260 : vector<16x16xi1>, vector<16x16xf32>
    %cst_84 = arith.constant dense<0xFF800000> : vector<16xf32>
    %262 = vector.multi_reduction <maximumf>, %261, %cst_84 [1] : vector<16x16xf32> to vector<16xf32>
    %263 = vector.shape_cast %262 : vector<16xf32> to vector<16x1xf32>
    %264 = vector.broadcast %263 : vector<16x1xf32> to vector<16x16xf32>
    %265 = arith.subf %261, %264 : vector<16x16xf32>
    %266 = math.exp %265 : vector<16x16xf32>
    %cst_85 = arith.constant dense<0.000000e+00> : vector<16xf32>
    %267 = vector.multi_reduction <add>, %266, %cst_85 [1] : vector<16x16xf32> to vector<16xf32>
    %268 = vector.shape_cast %267 : vector<16xf32> to vector<16x1xf32>
    %269 = tpu.reciprocal %268 {approx = true} : vector<16x1xf32> -> vector<16x1xf32>
    %270 = vector.broadcast %269 : vector<16x1xf32> to vector<16x16xf32>
    %271 = arith.mulf %266, %270 : vector<16x16xf32>
    %272 = arith.truncf %271 : vector<16x16xf32> to vector<16x16xbf16>
    %cst_86 = arith.constant dense<0.000000e+00> : vector<16x8xf32>
    %273 = tpu.matmul %272, %258, %cst_86 {dimension_numbers = #tpu.dot_dimension_numbers<[1], [0], [0], [1], [0, 0, 1, 1], [], []>} : vector<16x16xbf16>, vector<16x8xbf16>, vector<16x8xf32> -> vector<16x8xf32>
    %274 = vector.extract_strided_slice %229 {offsets = [0, 16], sizes = [16, 8], strides = [1, 1]} : vector<16x32xf32> to vector<16x8xf32>
    %275 = arith.truncf %274 : vector<16x8xf32> to vector<16x8xbf16>
    %276 = vector.extract_strided_slice %230 {offsets = [0, 16], sizes = [16, 8], strides = [1, 1]} : vector<16x32xf32> to vector<16x8xf32>
    %277 = arith.truncf %276 : vector<16x8xf32> to vector<16x8xbf16>
    %278 = vector.extract_strided_slice %231 {offsets = [0, 16], sizes = [16, 8], strides = [1, 1]} : vector<16x32xf32> to vector<16x8xf32>
    %279 = arith.truncf %278 : vector<16x8xf32> to vector<16x8xbf16>
    %cst_87 = arith.constant dense<0.000000e+00> : vector<16x16xf32>
    %280 = tpu.matmul %275, %277, %cst_87 {dimension_numbers = #tpu.dot_dimension_numbers<[1], [1], [0], [0], [0, 0, 1, 0], [], []>} : vector<16x8xbf16>, vector<16x8xbf16>, vector<16x16xf32> -> vector<16x16xf32>
    %cst_88 = arith.constant -1.000000e+30 : f32
    %281 = vector.broadcast %cst_88 : f32 to vector<16x16xf32>
    %282 = arith.select %44, %280, %281 : vector<16x16xi1>, vector<16x16xf32>
    %cst_89 = arith.constant dense<0xFF800000> : vector<16xf32>
    %283 = vector.multi_reduction <maximumf>, %282, %cst_89 [1] : vector<16x16xf32> to vector<16xf32>
    %284 = vector.shape_cast %283 : vector<16xf32> to vector<16x1xf32>
    %285 = vector.broadcast %284 : vector<16x1xf32> to vector<16x16xf32>
    %286 = arith.subf %282, %285 : vector<16x16xf32>
    %287 = math.exp %286 : vector<16x16xf32>
    %cst_90 = arith.constant dense<0.000000e+00> : vector<16xf32>
    %288 = vector.multi_reduction <add>, %287, %cst_90 [1] : vector<16x16xf32> to vector<16xf32>
    %289 = vector.shape_cast %288 : vector<16xf32> to vector<16x1xf32>
    %290 = tpu.reciprocal %289 {approx = true} : vector<16x1xf32> -> vector<16x1xf32>
    %291 = vector.broadcast %290 : vector<16x1xf32> to vector<16x16xf32>
    %292 = arith.mulf %287, %291 : vector<16x16xf32>
    %293 = arith.truncf %292 : vector<16x16xf32> to vector<16x16xbf16>
    %cst_91 = arith.constant dense<0.000000e+00> : vector<16x8xf32>
    %294 = tpu.matmul %293, %279, %cst_91 {dimension_numbers = #tpu.dot_dimension_numbers<[1], [0], [0], [1], [0, 0, 1, 1], [], []>} : vector<16x16xbf16>, vector<16x8xbf16>, vector<16x8xf32> -> vector<16x8xf32>
    %295 = vector.extract_strided_slice %229 {offsets = [0, 24], sizes = [16, 8], strides = [1, 1]} : vector<16x32xf32> to vector<16x8xf32>
    %296 = arith.truncf %295 : vector<16x8xf32> to vector<16x8xbf16>
    %297 = vector.extract_strided_slice %230 {offsets = [0, 24], sizes = [16, 8], strides = [1, 1]} : vector<16x32xf32> to vector<16x8xf32>
    %298 = arith.truncf %297 : vector<16x8xf32> to vector<16x8xbf16>
    %299 = vector.extract_strided_slice %231 {offsets = [0, 24], sizes = [16, 8], strides = [1, 1]} : vector<16x32xf32> to vector<16x8xf32>
    %300 = arith.truncf %299 : vector<16x8xf32> to vector<16x8xbf16>
    %cst_92 = arith.constant dense<0.000000e+00> : vector<16x16xf32>
    %301 = tpu.matmul %296, %298, %cst_92 {dimension_numbers = #tpu.dot_dimension_numbers<[1], [1], [0], [0], [0, 0, 1, 0], [], []>} : vector<16x8xbf16>, vector<16x8xbf16>, vector<16x16xf32> -> vector<16x16xf32>
    %cst_93 = arith.constant -1.000000e+30 : f32
    %302 = vector.broadcast %cst_93 : f32 to vector<16x16xf32>
    %303 = arith.select %44, %301, %302 : vector<16x16xi1>, vector<16x16xf32>
    %cst_94 = arith.constant dense<0xFF800000> : vector<16xf32>
    %304 = vector.multi_reduction <maximumf>, %303, %cst_94 [1] : vector<16x16xf32> to vector<16xf32>
    %305 = vector.shape_cast %304 : vector<16xf32> to vector<16x1xf32>
    %306 = vector.broadcast %305 : vector<16x1xf32> to vector<16x16xf32>
    %307 = arith.subf %303, %306 : vector<16x16xf32>
    %308 = math.exp %307 : vector<16x16xf32>
    %cst_95 = arith.constant dense<0.000000e+00> : vector<16xf32>
    %309 = vector.multi_reduction <add>, %308, %cst_95 [1] : vector<16x16xf32> to vector<16xf32>
    %310 = vector.shape_cast %309 : vector<16xf32> to vector<16x1xf32>
    %311 = tpu.reciprocal %310 {approx = true} : vector<16x1xf32> -> vector<16x1xf32>
    %312 = vector.broadcast %311 : vector<16x1xf32> to vector<16x16xf32>
    %313 = arith.mulf %308, %312 : vector<16x16xf32>
    %314 = arith.truncf %313 : vector<16x16xf32> to vector<16x16xbf16>
    %cst_96 = arith.constant dense<0.000000e+00> : vector<16x8xf32>
    %315 = tpu.matmul %314, %300, %cst_96 {dimension_numbers = #tpu.dot_dimension_numbers<[1], [0], [0], [1], [0, 0, 1, 1], [], []>} : vector<16x16xbf16>, vector<16x8xbf16>, vector<16x8xf32> -> vector<16x8xf32>
    %316 = tpu.concatenate %252, %273, %294, %315 in 1 : vector<16x8xf32>, vector<16x8xf32>, vector<16x8xf32>, vector<16x8xf32> -> vector<16x32xf32>
    %317 = arith.truncf %316 : vector<16x32xf32> to vector<16x32xbf16>
    %c1_i32_97 = arith.constant 1 : i32
    %c0_i32_98 = arith.constant 0 : i32
    %c0_i32_99 = arith.constant 0 : i32
    %318 = tpu.memref_slice %arg2[%c1_i32_97, %c0_i32_98, %c0_i32_99] : memref<2x224x128xbf16, #tpu.memory_space<vmem>> -> memref<1x224x128xbf16, #tpu.memory_space<vmem>>
    %319 = tpu.memref_squeeze %318 : memref<1x224x128xbf16, #tpu.memory_space<vmem>> -> memref<224x128xbf16, #tpu.memory_space<vmem>>
    %c32_100 = arith.constant 32 : index
    %c0_101 = arith.constant 0 : index
    %320 = vector.load %319[%c32_100, %c0_101] : memref<224x128xbf16, #tpu.memory_space<vmem>>, vector<32x32xbf16>
    %cst_102 = arith.constant dense<0.000000e+00> : vector<16x32xf32>
    %321 = tpu.matmul %317, %320, %cst_102 {dimension_numbers = #tpu.dot_dimension_numbers<[1], [0], [0], [1], [0, 0, 1, 1], [], []>} : vector<16x32xbf16>, vector<32x32xbf16>, vector<16x32xf32> -> vector<16x32xf32>
    %322 = vector.extract_strided_slice %220 {offsets = [1, 0], sizes = [1, 32], strides = [1, 1]} : vector<8x128xf32> to vector<1x32xf32>
    %323 = vector.broadcast %322 : vector<1x32xf32> to vector<16x32xf32>
    %324 = arith.addf %321, %323 : vector<16x32xf32>
    %325 = arith.addf %324, %218 : vector<16x32xf32>
    %326 = vector.extract_strided_slice %220 {offsets = [2, 0], sizes = [1, 32], strides = [1, 1]} : vector<8x128xf32> to vector<1x32xf32>
    %327 = vector.extract_strided_slice %220 {offsets = [3, 0], sizes = [1, 32], strides = [1, 1]} : vector<8x128xf32> to vector<1x32xf32>
    %cst_103 = arith.constant dense<0.000000e+00> : vector<16xf32>
    %328 = vector.multi_reduction <add>, %325, %cst_103 [1] : vector<16x32xf32> to vector<16xf32>
    %329 = vector.shape_cast %328 : vector<16xf32> to vector<16x1xf32>
    %cst_104 = arith.constant 3.200000e+01 : f32
    %330 = vector.broadcast %cst_104 : f32 to vector<16x1xf32>
    %331 = arith.divf %329, %330 : vector<16x1xf32>
    %332 = vector.broadcast %331 : vector<16x1xf32> to vector<16x32xf32>
    %333 = arith.subf %325, %332 : vector<16x32xf32>
    %334 = arith.mulf %333, %333 : vector<16x32xf32>
    %cst_105 = arith.constant dense<0.000000e+00> : vector<16xf32>
    %335 = vector.multi_reduction <add>, %334, %cst_105 [1] : vector<16x32xf32> to vector<16xf32>
    %336 = vector.shape_cast %335 : vector<16xf32> to vector<16x1xf32>
    %cst_106 = arith.constant 3.200000e+01 : f32
    %337 = vector.broadcast %cst_106 : f32 to vector<16x1xf32>
    %338 = arith.divf %336, %337 : vector<16x1xf32>
    %339 = vector.broadcast %331 : vector<16x1xf32> to vector<16x32xf32>
    %340 = arith.subf %325, %339 : vector<16x32xf32>
    %cst_107 = arith.constant 9.99999974E-6 : f32
    %341 = vector.broadcast %cst_107 : f32 to vector<16x1xf32>
    %342 = arith.addf %338, %341 : vector<16x1xf32>
    %343 = math.rsqrt %342 : vector<16x1xf32>
    %344 = vector.broadcast %343 : vector<16x1xf32> to vector<16x32xf32>
    %345 = arith.mulf %340, %344 : vector<16x32xf32>
    %346 = vector.broadcast %326 : vector<1x32xf32> to vector<16x32xf32>
    %347 = arith.mulf %345, %346 : vector<16x32xf32>
    %348 = vector.broadcast %327 : vector<1x32xf32> to vector<16x32xf32>
    %349 = arith.addf %347, %348 : vector<16x32xf32>
    %350 = arith.truncf %349 : vector<16x32xf32> to vector<16x32xbf16>
    %c1_i32_108 = arith.constant 1 : i32
    %c0_i32_109 = arith.constant 0 : i32
    %c0_i32_110 = arith.constant 0 : i32
    %351 = tpu.memref_slice %arg2[%c1_i32_108, %c0_i32_109, %c0_i32_110] : memref<2x224x128xbf16, #tpu.memory_space<vmem>> -> memref<1x224x128xbf16, #tpu.memory_space<vmem>>
    %352 = tpu.memref_squeeze %351 : memref<1x224x128xbf16, #tpu.memory_space<vmem>> -> memref<224x128xbf16, #tpu.memory_space<vmem>>
    %c64_111 = arith.constant 64 : index
    %c0_112 = arith.constant 0 : index
    %353 = vector.load %352[%c64_111, %c0_112] : memref<224x128xbf16, #tpu.memory_space<vmem>>, vector<32x128xbf16>
    %cst_113 = arith.constant dense<0.000000e+00> : vector<16x128xf32>
    %354 = tpu.matmul %350, %353, %cst_113 {dimension_numbers = #tpu.dot_dimension_numbers<[1], [0], [0], [1], [0, 0, 1, 1], [], []>} : vector<16x32xbf16>, vector<32x128xbf16>, vector<16x128xf32> -> vector<16x128xf32>
    %355 = vector.extract_strided_slice %220 {offsets = [4, 0], sizes = [1, 128], strides = [1, 1]} : vector<8x128xf32> to vector<1x128xf32>
    %356 = vector.broadcast %355 : vector<1x128xf32> to vector<16x128xf32>
    %357 = arith.addf %354, %356 : vector<16x128xf32>
    %cst_114 = arith.constant 0.000000e+00 : f32
    %358 = vector.broadcast %cst_114 : f32 to vector<16x128xf32>
    %359 = arith.maximumf %357, %358 : vector<16x128xf32>
    %360 = arith.truncf %359 : vector<16x128xf32> to vector<16x128xbf16>
    %c1_i32_115 = arith.constant 1 : i32
    %c0_i32_116 = arith.constant 0 : i32
    %c0_i32_117 = arith.constant 0 : i32
    %361 = tpu.memref_slice %arg2[%c1_i32_115, %c0_i32_116, %c0_i32_117] : memref<2x224x128xbf16, #tpu.memory_space<vmem>> -> memref<1x224x128xbf16, #tpu.memory_space<vmem>>
    %362 = tpu.memref_squeeze %361 : memref<1x224x128xbf16, #tpu.memory_space<vmem>> -> memref<224x128xbf16, #tpu.memory_space<vmem>>
    %c96_118 = arith.constant 96 : index
    %c0_119 = arith.constant 0 : index
    %363 = vector.load %362[%c96_118, %c0_119] : memref<224x128xbf16, #tpu.memory_space<vmem>>, vector<128x32xbf16>
    %cst_120 = arith.constant dense<0.000000e+00> : vector<16x32xf32>
    %364 = tpu.matmul %360, %363, %cst_120 {dimension_numbers = #tpu.dot_dimension_numbers<[1], [0], [0], [1], [0, 0, 1, 1], [], []>} : vector<16x128xbf16>, vector<128x32xbf16>, vector<16x32xf32> -> vector<16x32xf32>
    %365 = vector.extract_strided_slice %220 {offsets = [5, 0], sizes = [1, 32], strides = [1, 1]} : vector<8x128xf32> to vector<1x32xf32>
    %366 = vector.broadcast %365 : vector<1x32xf32> to vector<16x32xf32>
    %367 = arith.addf %364, %366 : vector<16x32xf32>
    %368 = arith.addf %367, %349 : vector<16x32xf32>
    %369 = vector.extract_strided_slice %220 {offsets = [6, 0], sizes = [1, 32], strides = [1, 1]} : vector<8x128xf32> to vector<1x32xf32>
    %370 = vector.extract_strided_slice %220 {offsets = [7, 0], sizes = [1, 32], strides = [1, 1]} : vector<8x128xf32> to vector<1x32xf32>
    %cst_121 = arith.constant dense<0.000000e+00> : vector<16xf32>
    %371 = vector.multi_reduction <add>, %368, %cst_121 [1] : vector<16x32xf32> to vector<16xf32>
    %372 = vector.shape_cast %371 : vector<16xf32> to vector<16x1xf32>
    %cst_122 = arith.constant 3.200000e+01 : f32
    %373 = vector.broadcast %cst_122 : f32 to vector<16x1xf32>
    %374 = arith.divf %372, %373 : vector<16x1xf32>
    %375 = vector.broadcast %374 : vector<16x1xf32> to vector<16x32xf32>
    %376 = arith.subf %368, %375 : vector<16x32xf32>
    %377 = arith.mulf %376, %376 : vector<16x32xf32>
    %cst_123 = arith.constant dense<0.000000e+00> : vector<16xf32>
    %378 = vector.multi_reduction <add>, %377, %cst_123 [1] : vector<16x32xf32> to vector<16xf32>
    %379 = vector.shape_cast %378 : vector<16xf32> to vector<16x1xf32>
    %cst_124 = arith.constant 3.200000e+01 : f32
    %380 = vector.broadcast %cst_124 : f32 to vector<16x1xf32>
    %381 = arith.divf %379, %380 : vector<16x1xf32>
    %382 = vector.broadcast %374 : vector<16x1xf32> to vector<16x32xf32>
    %383 = arith.subf %368, %382 : vector<16x32xf32>
    %cst_125 = arith.constant 9.99999974E-6 : f32
    %384 = vector.broadcast %cst_125 : f32 to vector<16x1xf32>
    %385 = arith.addf %381, %384 : vector<16x1xf32>
    %386 = math.rsqrt %385 : vector<16x1xf32>
    %387 = vector.broadcast %386 : vector<16x1xf32> to vector<16x32xf32>
    %388 = arith.mulf %383, %387 : vector<16x32xf32>
    %389 = vector.broadcast %369 : vector<1x32xf32> to vector<16x32xf32>
    %390 = arith.mulf %388, %389 : vector<16x32xf32>
    %391 = vector.broadcast %370 : vector<1x32xf32> to vector<16x32xf32>
    %392 = arith.addf %390, %391 : vector<16x32xf32>
    %c0_126 = arith.constant 0 : index
    %c0_127 = arith.constant 0 : index
    %393 = vector.load %arg4[%c0_126, %c0_127] : memref<16x32xf32, #tpu.memory_space<vmem>>, vector<16x32xf32>
    tpu.vector_store %arg4[%c0_126, %c0_127], %392 {strides = array<i32>} : memref<16x32xf32, #tpu.memory_space<vmem>>, vector<16x32xf32>,
    return
  }
}

</mosaic_0001>

<bundles_post_ra>
// kernel: bert_forward.1
= control target key start
LH: loop header
LB: loop body
LE: loop exit
PB: predicated region body
PF: predicated region fallthrough
CT: control target
= control target key end

     0   :  { %9 = vsyncpa [#allocation3], 0  ;;  %s3084_s0 = inlined_call_operand.vmem [shape: s32[16,1], index: 0, kind: input, shape index: {}]   ;;  %s3085_s1 = inlined_call_operand.vmem [shape: f32[80,32], index: 1, kind: input, shape index: {}]   ;;  %s3086_s2 = inlined_call_operand.hbm [shape: bf16[2,224,128], index: 2, kind: input, shape index: {}]   ;;  %s3087_s3 = inlined_call_operand.vmem [shape: f32[2,8,128], index: 3, kind: input, shape index: {}]   ;;  %s3088_s4 = inlined_call_operand.hbm [shape: f32[16,32], index: 4, kind: output, shape index: {}]  }
   0x1   :  { %10 = vsyncpa [#allocation4], 0  ;;  %s2588_s15 = smov [#allocation2]   ;;  %s2540_s19 = scalar_lea.hbm %s3086_s2, 3584 }
   0x2   :  { %s20_s16 = sshll.u32 %s2588_s15, 4  ;;  %p2541_p0 = scmp.ne.s32.totalorder %s3086_s2, %s2540_s19  ;;  %s21_s16 = int_to_ptr.vmem [resolvable:$true] %s20_s16 }
   0x3   :  { %p2544_p1 = scmp.lt.u32.totalorder %s2540_s19, %s3086_s2 }
   0x5   :  { %p2546_p2 = pnand %p2544_p1, %p2541_p0 }
   0x7   :  { %2549 = shalt.err (!%p2546_p2)
}
   0x8   :  { %s2550_s24 = scalar_lea.vmem %s21_s16, 3584  ;;  %p2555_p4 = scmp.lt.s32.totalorder %s21_s16, %s21_s16 }
   0x9   :  { %p2551_p3 = scmp.ne.s32.totalorder %s21_s16, %s2550_s24  ;;  %p2556_p5 = scmp.lt.s32.totalorder %s2550_s24, %s2550_s24 }
   0xb   :  { %p2557_p6 = por %p2556_p5, %p2555_p4 }
   0xd   :  { %p2558_p7 = pnand %p2557_p6, %p2551_p3 }
   0xf   :  { %2561 = shalt.err (!%p2558_p7)
}
  0x10   :  { %s2589_s25 = smov 64   ;;  %s2590_s26 = smov 4  }
  0x11   :  { %26 = dma.hbm_to_vmem [thread:$0]  %s3086_s2, 3584, %s21_s16, [#allocation3], %s2589_s25, %s2589_s25, %s2590_s26  }
  0x12   :  { %2584 = dma.done.wait [#allocation3], 3584  }
  0x13   :  { %2585 = vsyncadd [#allocation3], 4294963712  ;;  %v2591_v0 = vmov 0   ;;  %v33_v1 = vld [vmem:[%s3084_s0] sm:$0xff]  ;;  %v50_v3 = vld [vmem:[%s3085_s1 + $0x8] sm:$0xff]  ;;  %v2592_v10 = vmov 0.0   ;;  %v35_v16 = vlaneseq }
  0x14   :  { %2401 = vset.pattern.permute.xlu0 %v2591_v0  ;;  %v49_v2 = vld [vmem:[%s3085_s1] sm:$0xff]  ;;  %v51_v4 = vld [vmem:[%s3085_s1 + $0x10] sm:$0xff]  ;;  %v52_v5 = vld [vmem:[%s3085_s1 + $0x18] sm:$0xff]  ;;  %2194 = vmatprep.subr.bf16.mxu0 %v2592_v10  ;;  %vm59_vm0 = vcmask 523264   ;;  %vm2593_vm3 = vmmov 0   ;;  %vm204_vm4 = vcmask 261120  }
  0x15   :  { %38 = vperm.xlu0 %2401, %v33_v1   ;;  %v34_v6 = vld [vmem:[%s3084_s0 + $0x8] sm:$0xff]  ;;  %v2364_v7 = vpack.c.bf16 %v50_v3, %v49_v2  ;;  %v2368_v8 = vpack.c.bf16 %v52_v5, %v51_v4  ;;  %v53_v9 = vld [vmem:[%s3085_s1 + $0x20] sm:$0xff]  ;;  %v55_v12 = vld [vmem:[%s3085_s1 + $0x30] sm:$0xff]  ;;  %v2680_v17 = vand.u32 127, %v35_v16  ;;  %2196 = vmatprep.mubr.msk.bf16.mxu0 %vm2593_vm3, %v2592_v10  ;;  %v2707_v31 = vshrl.u32 %v35_v16, 7  ;;  %s2594_s27 = smov 120  }
  0x16   :  { %v54_v11 = vld [vmem:[%s3085_s1 + $0x28] sm:$0xff]  ;;  %v56_v14 = vld [vmem:[%s3085_s1 + $0x38] sm:$0xff]  ;;  %v2432_v21 = vld [vmem:[#allocation2] sm:$0xff]   ;;  %s2595_s28 = smov 96   ;;  %s2596_s29 = smov 112   ;;  %vm253_vm5 = vcmask 64512  }
  0x17   :  { %2365 = vmatprep.subr.bf16.mxu1 %v2364_v7  ;;  %v2372_v13 = vpack.c.bf16 %v54_v11, %v53_v9  ;;  %v2376_v15 = vpack.c.bf16 %v56_v14, %v55_v12  ;;  %v2433_v23 = vld [vmem:[#allocation2 + $0x8] sm:$0xff]   ;;  %v57_v25 = vld [vmem:[%s3085_s1 + $0x40] sm:$0xff]  ;;  %v190_v32 = vsub.s32 0, %v2707_v31  ;;  %s2597_s30 = smov 88   ;;  %s2598_s5 = smov 104   ;;  %v143_v53 = vadd.s32 8, %v2707_v31 }
  0x18   :  { %2367 = vmatpush3.bf16.msra.mxu1 %v2364_v7  ;;  %v58_v24 = vld [vmem:[%s3085_s1 + $0x48] sm:$0xff]  ;;  %v2713_v33 = vld [vmem:[%s3087_s3] sm:$0xff]  ;;  %s2599_s6 = smov 80   ;;  %s2600_s7 = smov 72   ;;  %v148_v54 = vand.u32 7, %v2707_v31  ;;  %v172_v55 = vand.u32 7, %v2680_v17 }
  0x19   :  { %41 = vperm.xlu0 %2401, %v34_v6   ;;  %2369 = vmatprep.subr.bf16.mxu1 %v2368_v8  ;;  %v191_v34 = vrot.slane %v2713_v33, %v190_v32  ;;  %v155_v56 = vand.u32 7, %v143_v53  ;;  %vm303_vm7 = vcmask 130048   ;;  %s2601_s8 = smov 56   ;;  %s2602_s9 = smov 48   ;;  %vm771_vm9 = vcmask 195584  }
  0x1a   :  { %vm2758_vm6 = vcmp.eq.s32.totalorder %v148_v54, %v172_v55  ;;  %s2603_s10 = smov 40   ;;  %s2604_s2 = smov 8  }
  0x1b   :  { %vm2762_vm8 = vcmp.eq.s32.totalorder %v155_v56, %v172_v55  ;;  %s2605_s11 = smov 16   ;;  %s2606_s12 = smov 24  }
  0x1c   :  { %2371 = vmatpush3.bf16.msra.mxu1 %v2368_v8 }
  0x1d   :  { %2373 = vmatprep.subr.bf16.mxu1 %v2372_v13 }
  0x20   :  { %2375 = vmatpush3.bf16.msra.mxu1 %v2372_v13 }
  0x21   :  { %2377 = vmatprep.subr.bf16.mxu1 %v2376_v15 }
  0x24   :  { %2379 = vmatpush3.bf16.msra.mxu1 %v2376_v15 }
  0x25   :  { %2180 = vmatprep.subr.bf16.mxu1 %v2592_v10 }
  0x94   :  { %v39_v18 = vpop.permute.xlu0 %38 }
  0x95   :  { %vm43_vm1 = vcmp.eq.s32.totalorder %v2680_v17, %v39_v18 }
  0x96   :  { %v2028_v19 = vsel %vm43_vm1, 1.0, %v2592_v10 }
  0x97   :  { %2177 = vmatprep.mubr.msk.f32.mxu1 %vm59_vm0, %v2028_v19 }
  0x98   :  { %v42_v20 = vpop.permute.xlu0 %41 }
  0x99   :  { %vm44_vm2 = vcmp.eq.s32.totalorder %v2680_v17, %v42_v20 }
  0x9a   :  { %v2029_v22 = vsel %vm44_vm2, 1.0, %v2592_v10 }
  0x9b   :  { %2178 = vmatmul.mubr.msk.f32.vlgmr.msra.gmra.mrb[0].mxu1 %vm59_vm0, %v2029_v22 }
  0x9c   :  { %2181 = vmatpush3.bf16.msra.mxu1 %v2432_v21  ;;  %2184 = vmatprep.mubr.msk.bf16.mxu1 %vm2593_vm3, %v2592_v10 }
  0x9d   :  { %2182 = vmatprep.subr.bf16.mxu1 %v2592_v10 }
  0xa0   :  { %2183 = vmatpush3.bf16.msra.mxu1 %v2433_v23 }
  0xa1   :  { %2188 = vmatprep.subr.bf16.mxu1 %v2592_v10 }
 0x16e   :  { %v2179_v26 = vpop.f32.mrb[0].mxu1 }
 0x16f   :  { %v2698_v27 = vadd.f32 %v2179_v26, %v58_v24  ;;  %v132_v28 = vpop.f32.mrb[1].mxu1 }
 0x170   :  { %v2700_v29 = vadd.f32 %v132_v28, %v57_v25 }
 0x172   :  { %v183_v30 = vpack.c.bf16 %v2698_v27, %v2700_v29 }
 0x174   :  { %2185 = vmatmul.mubr.msk.bf16.vlgmr.msra.gmra.mrb[4].mxu1 %vm204_vm4, %v183_v30 }
 0x175   :  { %2190 = vmatprep.mubr.msk.bf16.mxu1 %vm2593_vm3, %v2592_v10 }
 0x247   :  { %v242_v35 = vpop.f32.mrb[4].mxu1 }
 0x248   :  { %v2186_v36 = vpop.f32.mrb[5].mxu1  ;;  %v243_v38 = vadd.f32 %v242_v35, %v191_v34 }
 0x249   :  { %v245_v37 = vpop.f32.mrb[6].mxu1 }
 0x24a   :  { %v246_v39 = vadd.f32 %v245_v37, %v191_v34  ;;  %v2187_v40 = vpop.f32.mrb[7].mxu1 }
 0x24c   :  { %v2718_v41 = vpack.c.bf16 %v246_v39, %v243_v38 }
 0x24e   :  { %374 = vrot.lane.b32.xlu0 %v2718_v41, %s2594_s27  ;;  %251 = vrot.lane.b32.xlu1 %v2718_v41, %s2595_s28 }
 0x252   :  { %497 = vrot.lane.b32.xlu0 %v2718_v41, %s2596_s29  ;;  %376 = vrot.lane.b32.xlu1 %v2718_v41, %s2597_s30 }
 0x256   :  { %620 = vrot.lane.b32.xlu0 %v2718_v41, %s2598_s5  ;;  %499 = vrot.lane.b32.xlu1 %v2718_v41, %s2599_s6 }
 0x25a   :  { %622 = vrot.lane.b32.xlu1 %v2718_v41, %s2600_s7 }
 0x2c0   :  { %v252_v42 = vpop.permute.xlu1 %251  ;;  %v375_v47 = vpop.permute.xlu0 %374 }
 0x2c1   :  { %v258_v43 = vsel %vm253_vm5, %v252_v42, 0 }
 0x2c2   :  { %2189 = vmatpush3.bf16.xpose.msra.mxu1 %v258_v43 }
 0x2c3   :  { %2200 = vmatprep.subr.bf16.mxu1 %v2592_v10 }
 0x2c4   :  { %v377_v44 = vpop.permute.xlu1 %376  ;;  %v498_v50 = vpop.permute.xlu0 %497 }
 0x2c5   :  { %v382_v45 = vsel %vm253_vm5, %v377_v44, 0 }
 0x2c8   :  { %v500_v46 = vpop.permute.xlu1 %499  ;;  %v621_v52 = vpop.permute.xlu0 %620 }
 0x2c9   :  { %2191 = vmatmul.mubr.msk.bf16.vlgmr.msra.gmra.mrb[8].mxu1 %vm253_vm5, %v2718_v41  ;;  %v505_v48 = vsel %vm253_vm5, %v500_v46, 0 }
 0x2ca   :  { %2201 = vmatpush3.bf16.xpose.msra.mxu1 %v382_v45  ;;  %2202 = vmatprep.mubr.msk.bf16.mxu1 %vm2593_vm3, %v2592_v10 }
 0x2cb   :  { %2212 = vmatprep.subr.bf16.mxu1 %v2592_v10 }
 0x2cc   :  { %v623_v49 = vpop.permute.xlu1 %622 }
 0x2cd   :  { %v628_v51 = vsel %vm253_vm5, %v623_v49, 0 }
 0x2d1   :  { %2203 = vmatmul.mubr.msk.bf16.vlgmr.msra.gmra.mrb[12].mxu1 %vm253_vm5, %v375_v47 }
 0x2d2   :  { %2213 = vmatpush3.bf16.xpose.msra.mxu1 %v505_v48  ;;  %2214 = vmatprep.mubr.msk.bf16.mxu1 %vm2593_vm3, %v2592_v10 }
 0x2d3   :  { %2224 = vmatprep.subr.bf16.mxu1 %v2592_v10 }
 0x2d9   :  { %2215 = vmatmul.mubr.msk.bf16.vlgmr.msra.gmra.mrb[16].mxu1 %vm253_vm5, %v498_v50 }
 0x2da   :  { %2225 = vmatpush3.bf16.xpose.msra.mxu1 %v628_v51  ;;  %2226 = vmatprep.mubr.msk.bf16.mxu1 %vm2593_vm3, %v2592_v10 }
 0x2db   :  { %2236 = vmatprep.subr.bf16.mxu1 %v2592_v10 }
 0x2e1   :  { %2227 = vmatmul.mubr.msk.bf16.vlgmr.msra.gmra.mrb[20].mxu1 %vm253_vm5, %v621_v52 }
 0x2e2   :  { %2240 = vmatprep.mubr.msk.bf16.mxu1 %vm2593_vm3, %v2592_v10 }
 0x39c   :  { %v294_v59 = vpop.f32.mrb[8].mxu1 }
 0x39d   :  { %v301_v60 = vsel %vm2758_vm6, %v294_v59, -1e+30  ;;  %v2192_v61 = vpop.f32.mrb[9].mxu1 }
 0x39e   :  { %v297_v62 = vpop.f32.mrb[10].mxu1  ;;  %v304_v63 = vsel %vm303_vm7, %v301_v60, -inf }
 0x39f   :  { %v302_v0 = vsel %vm2762_vm8, %v297_v62, -1e+30  ;;  %305 = vmax.xlane.f32.xlu1 %v304_v63  ;;  %v2193_v1 = vpop.f32.mrb[11].mxu1 }
 0x3a0   :  { %v307_v2 = vsel %vm303_vm7, %v302_v0, -inf }
 0x3a1   :  { %308 = vmax.xlane.f32.xlu0 %v307_v2 }
 0x3a4   :  { %v418_v3 = vpop.f32.mrb[12].mxu1 }
 0x3a5   :  { %v425_v4 = vsel %vm2758_vm6, %v418_v3, -1e+30  ;;  %v2204_v5 = vpop.f32.mrb[13].mxu1 }
 0x3a6   :  { %v421_v6 = vpop.f32.mrb[14].mxu1  ;;  %v427_v7 = vsel %vm303_vm7, %v425_v4, -inf }
 0x3a7   :  { %v426_v8 = vsel %vm2762_vm8, %v421_v6, -1e+30  ;;  %428 = vmax.xlane.f32.xlu0 %v427_v7  ;;  %v2205_v9 = vpop.f32.mrb[15].mxu1 }
 0x3a8   :  { %v430_v11 = vsel %vm303_vm7, %v426_v8, -inf }
 0x3a9   :  { %431 = vmax.xlane.f32.xlu1 %v430_v11 }
 0x3ac   :  { %v541_v12 = vpop.f32.mrb[16].mxu1 }
 0x3ad   :  { %v548_v13 = vsel %vm2758_vm6, %v541_v12, -1e+30  ;;  %v2216_v14 = vpop.f32.mrb[17].mxu1 }
 0x3ae   :  { %v544_v15 = vpop.f32.mrb[18].mxu1  ;;  %v550_v16 = vsel %vm303_vm7, %v548_v13, -inf }
 0x3af   :  { %v549_v17 = vsel %vm2762_vm8, %v544_v15, -1e+30  ;;  %551 = vmax.xlane.f32.xlu0 %v550_v16  ;;  %v2217_v18 = vpop.f32.mrb[19].mxu1 }
 0x3b0   :  { %v553_v19 = vsel %vm303_vm7, %v549_v17, -inf }
 0x3b1   :  { %554 = vmax.xlane.f32.xlu1 %v553_v19 }
 0x3b4   :  { %v664_v20 = vpop.f32.mrb[20].mxu1 }
 0x3b5   :  { %v671_v21 = vsel %vm2758_vm6, %v664_v20, -1e+30  ;;  %v2228_v22 = vpop.f32.mrb[21].mxu1 }
 0x3b6   :  { %v667_v23 = vpop.f32.mrb[22].mxu1  ;;  %v673_v24 = vsel %vm303_vm7, %v671_v21, -inf }
 0x3b7   :  { %v672_v25 = vsel %vm2762_vm8, %v667_v23, -1e+30  ;;  %674 = vmax.xlane.f32.xlu0 %v673_v24  ;;  %v2229_v26 = vpop.f32.mrb[23].mxu1 }
 0x3b8   :  { %v676_v28 = vsel %vm303_vm7, %v672_v25, -inf }
 0x3b9   :  { %677 = vmax.xlane.f32.xlu1 %v676_v28 }
 0x42c   :  { %v306_v30 = vpop.xlane.xlu1 %305 }
 0x42d   :  { %v310_v34 = vsub.f32 %v301_v60, %v306_v30 }
 0x42e   :  { %v309_v35 = vpop.xlane.xlu0 %308 }
 0x42f   :  { %v312_v36 = vmul.f32 1.442695, %v310_v34  ;;  %v311_v37 = vsub.f32 %v302_v0, %v309_v35 }
 0x431   :  { %2460 = vpow2.f32 %v312_v36  ;;  %v314_v38 = vmul.f32 1.442695, %v311_v37 }
 0x433   :  { %2462 = vpow2.f32 %v314_v38 }
 0x434   :  { %v429_v39 = vpop.xlane.xlu0 %428 }
 0x435   :  { %v433_v40 = vsub.f32 %v425_v4, %v429_v39 }
 0x436   :  { %v432_v49 = vpop.xlane.xlu1 %431 }
 0x437   :  { %v435_v42 = vmul.f32 1.442695, %v433_v40  ;;  %v434_v50 = vsub.f32 %v426_v8, %v432_v49 }
 0x439   :  { %2464 = vpow2.f32 %v435_v42  ;;  %v437_v53 = vmul.f32 1.442695, %v434_v50 }
 0x43b   :  { %v2461_v43 = vpop.eup %2460  ;;  %2466 = vpow2.f32 %v437_v53 }
 0x43c   :  { %v316_v44 = vsel %vm303_vm7, %v2461_v43, 0.0  ;;  %v552_v52 = vpop.xlane.xlu0 %551 }
 0x43d   :  { %v2463_v45 = vpop.eup %2462  ;;  %317 = vadd.xlane.f32.xlu0 %v316_v44  ;;  %v556_v56 = vsub.f32 %v548_v13, %v552_v52 }
 0x43e   :  { %v319_v46 = vsel %vm303_vm7, %v2463_v45, 0.0  ;;  %v555_v51 = vpop.xlane.xlu1 %554 }
 0x43f   :  { %320 = vadd.xlane.f32.xlu1 %v319_v46  ;;  %v557_v54 = vsub.f32 %v549_v17, %v555_v51  ;;  %v558_v62 = vmul.f32 1.442695, %v556_v56 }
 0x441   :  { %v560_v60 = vmul.f32 1.442695, %v557_v54 }
 0x443   :  { %v2792_v47 = vpop.eup %2464  ;;  %2468 = vpow2.f32 %v560_v60 }
 0x444   :  { %v439_v48 = vsel %vm303_vm7, %v2792_v47, 0.0  ;;  %v675_v59 = vpop.xlane.xlu0 %674  ;;  %2470 = vpow2.f32 %v558_v62 }
 0x445   :  { %440 = vadd.xlane.f32.xlu0 %v439_v48  ;;  %v679_v63 = vsub.f32 %v671_v21, %v675_v59  ;;  %v2467_v2 = vpop.eup %2466  ;;  %v2434_v59 = vld [vmem:[#allocation2 + $0x10] sm:$0xff]  }
 0x446   :  { %v678_v55 = vpop.xlane.xlu1 %677  ;;  %v442_v3 = vsel %vm303_vm7, %v2467_v2, 0.0  ;;  %2237 = vmatpush3.bf16.msra.mxu1 %v2434_v59  ;;  %v2442_v59 = vld [vmem:[#allocation2 + $0x50] sm:$0xff]  }
 0x447   :  { %v680_v61 = vsub.f32 %v672_v25, %v678_v55  ;;  %v681_v1 = vmul.f32 1.442695, %v679_v63  ;;  %2238 = vmatprep.subr.bf16.mxu1 %v2592_v10 }
 0x449   :  { %v683_v0 = vmul.f32 1.442695, %v680_v61 }
 0x44b   :  { %2472 = vpow2.f32 %v683_v0  ;;  %v2435_v0 = vld [vmem:[#allocation2 + $0x18] sm:$0xff]  }
 0x44c   :  { %2474 = vpow2.f32 %v681_v1  ;;  %2239 = vmatpush3.bf16.msra.mxu1 %v2435_v0 }
 0x44d   :  { %v2469_v4 = vpop.eup %2468  ;;  %2252 = vmatprep.subr.bf16.mxu1 %v2592_v10 }
 0x44e   :  { %v2471_v5 = vpop.eup %2470  ;;  %v565_v6 = vsel %vm303_vm7, %v2469_v4, 0.0 }
 0x44f   :  { %v562_v8 = vsel %vm303_vm7, %v2471_v5, 0.0 }
 0x450   :  { %450 = vrot.lane.b32.xlu1 %v2718_v41, %s2601_s8 }
 0x455   :  { %v2802_v7 = vpop.eup %2472 }
 0x456   :  { %v2475_v9 = vpop.eup %2474  ;;  %v688_v11 = vsel %vm303_vm7, %v2802_v7, 0.0 }
 0x457   :  { %v685_v12 = vsel %vm303_vm7, %v2475_v9, 0.0 }
 0x45b   :  { %327 = vrot.lane.b32.xlu0 %v2718_v41, %s2589_s25 }
 0x474   :  { %443 = vadd.xlane.f32.xlu1 %v442_v3 }
 0x478   :  { %566 = vadd.xlane.f32.xlu1 %v565_v6 }
 0x47a   :  { %563 = vadd.xlane.f32.xlu0 %v562_v8 }
 0x47c   :  { %689 = vadd.xlane.f32.xlu1 %v688_v11 }
 0x47e   :  { %686 = vadd.xlane.f32.xlu0 %v685_v12 }
 0x48d   :  { %573 = vrot.lane.b32.xlu1 %v2718_v41, %s2602_s9 }
 0x494   :  { %696 = vrot.lane.b32.xlu0 %v2718_v41, %s2603_s10 }
 0x4ca   :  { %v318_v13 = vpop.xlane.xlu0 %317 }
 0x4cb   :  { %2476 = vrcp.f32 %v318_v13 }
 0x4cc   :  { %v321_v14 = vpop.xlane.xlu1 %320 }
 0x4cd   :  { %2478 = vrcp.f32 %v321_v14 }
 0x4d0   :  { %v451_v22 = vpop.permute.xlu1 %450 }
 0x4d2   :  { %v441_v15 = vpop.xlane.xlu0 %440 }
 0x4d3   :  { %2480 = vrcp.f32 %v441_v15 }
 0x4d5   :  { %v2477_v16 = vpop.eup %2476 }
 0x4d6   :  { %v328_v17 = vpop.permute.xlu0 %327  ;;  %v324_v19 = vmul.f32 %v2477_v16, %v2461_v43 }
 0x4d7   :  { %v2479_v18 = vpop.eup %2478  ;;  %2195 = vmatpush3.bf16.msra.mxu0 %v328_v17 }
 0x4d8   :  { %2206 = vmatprep.subr.bf16.mxu0 %v2592_v10  ;;  %v325_v20 = vmul.f32 %v2479_v18, %v2463_v45 }
 0x4da   :  { %v326_v21 = vpack.c.bf16 %v325_v20, %v324_v19 }
 0x4dc   :  { %2197 = vmatmul.mubr.msk.bf16.vlgmr.msra.gmra.mrb[0].mxu0 %vm303_vm7, %v326_v21 }
 0x4dd   :  { %2207 = vmatpush3.bf16.msra.mxu0 %v451_v22  ;;  %2208 = vmatprep.mubr.msk.bf16.mxu0 %vm2593_vm3, %v2592_v10  ;;  %v2481_v25 = vpop.eup %2480 }
 0x4de   :  { %2218 = vmatprep.subr.bf16.mxu0 %v2592_v10  ;;  %v447_v34 = vmul.f32 %v2481_v25, %v2792_v47  ;;  %v781_v25 = vsub.s32 1, %v2707_v31 }
 0x501   :  { %v444_v41 = vpop.xlane.xlu1 %443 }
 0x502   :  { %2482 = vrcp.f32 %v444_v41 }
 0x505   :  { %v567_v23 = vpop.xlane.xlu1 %566 }
 0x506   :  { %2484 = vrcp.f32 %v567_v23 }
 0x507   :  { %v564_v24 = vpop.xlane.xlu0 %563 }
 0x508   :  { %2486 = vrcp.f32 %v564_v24 }
 0x509   :  { %v690_v26 = vpop.xlane.xlu1 %689 }
 0x50b   :  { %v687_v28 = vpop.xlane.xlu0 %686 }
 0x50c   :  { %v2483_v30 = vpop.eup %2482  ;;  %2488 = vrcp.f32 %v687_v28 }
 0x50d   :  { %v448_v35 = vmul.f32 %v2483_v30, %v2467_v2  ;;  %2490 = vrcp.f32 %v690_v26  ;;  %v574_v38 = vpop.permute.xlu1 %573  ;;  %v782_v26 = vrot.slane %v2713_v33, %v781_v25 }
 0x50f   :  { %v449_v36 = vpack.c.bf16 %v448_v35, %v447_v34  ;;  %v697_v45 = vpop.permute.xlu0 %696 }
 0x510   :  { %v2485_v37 = vpop.eup %2484 }
 0x511   :  { %2209 = vmatmul.mubr.msk.bf16.vlgmr.msra.gmra.mrb[4].mxu0 %vm303_vm7, %v449_v36  ;;  %v571_v42 = vmul.f32 %v2485_v37, %v2469_v4 }
 0x512   :  { %v2487_v39 = vpop.eup %2486  ;;  %2219 = vmatpush3.bf16.msra.mxu0 %v574_v38  ;;  %2220 = vmatprep.mubr.msk.bf16.mxu0 %vm2593_vm3, %v2592_v10 }
 0x513   :  { %v570_v40 = vmul.f32 %v2487_v39, %v2471_v5  ;;  %2230 = vmatprep.subr.bf16.mxu0 %v2592_v10 }
 0x515   :  { %v572_v43 = vpack.c.bf16 %v571_v42, %v570_v40 }
 0x516   :  { %v2489_v44 = vpop.eup %2488 }
 0x517   :  { %v2491_v46 = vpop.eup %2490  ;;  %v693_v47 = vmul.f32 %v2489_v44, %v2475_v9 }
 0x518   :  { %v694_v48 = vmul.f32 %v2491_v46, %v2802_v7 }
 0x519   :  { %2221 = vmatmul.mubr.msk.bf16.vlgmr.msra.gmra.mrb[8].mxu0 %vm303_vm7, %v572_v43 }
 0x51a   :  { %2231 = vmatpush3.bf16.msra.mxu0 %v697_v45  ;;  %2232 = vmatprep.mubr.msk.bf16.mxu0 %vm2593_vm3, %v2592_v10  ;;  %v695_v49 = vpack.c.bf16 %v694_v48, %v693_v47 }
 0x51b   :  { %2244 = vmatprep.subr.bf16.mxu0 %v2592_v10 }
 0x521   :  { %2233 = vmatmul.mubr.msk.bf16.vlgmr.msra.gmra.mrb[12].mxu0 %vm303_vm7, %v695_v49 }
 0x522   :  { %2248 = vmatprep.mubr.msk.bf16.mxu0 %vm2593_vm3, %v2592_v10 }
 0x5af   :  { %v367_v50 = vpop.f32.mrb[0].mxu0 }
 0x5b0   :  { %v2198_v51 = vpop.f32.mrb[1].mxu0 }
 0x5b1   :  { %v370_v52 = vpop.f32.mrb[2].mxu0 }
 0x5b2   :  { %v2199_v53 = vpop.f32.mrb[3].mxu0 }
 0x5b3   :  { %v2438_v53 = vld [vmem:[#allocation2 + $0x30] sm:$0xff]  }
 0x5e4   :  { %v490_v54 = vpop.f32.mrb[4].mxu0 }
 0x5e5   :  { %v2210_v55 = vpop.f32.mrb[5].mxu0 }
 0x5e6   :  { %v493_v56 = vpop.f32.mrb[6].mxu0  ;;  %v2440_v55 = vld [vmem:[#allocation2 + $0x40] sm:$0xff]  }
 0x5e7   :  { %v2402_v60 = vpack.i.bf16 %v493_v56, %v490_v54  ;;  %v2211_v61 = vpop.f32.mrb[7].mxu0  ;;  %v2439_v54 = vld [vmem:[#allocation2 + $0x38] sm:$0xff]   ;;  %v2441_v56 = vld [vmem:[#allocation2 + $0x48] sm:$0xff]  }
 0x5e9   :  { %2403 = vrot.lane.b32.xlu1 %v2402_v60, %s2604_s2  ;;  %v2443_v60 = vld [vmem:[#allocation2 + $0x58] sm:$0xff]  }
 0x5ec   :  { %v613_v62 = vpop.f32.mrb[8].mxu0 }
 0x5ed   :  { %v2222_v63 = vpop.f32.mrb[9].mxu0 }
 0x5ee   :  { %v616_v1 = vpop.f32.mrb[10].mxu0 }
 0x5ef   :  { %v2407_v2 = vpack.i.bf16 %v616_v1, %v613_v62  ;;  %v2223_v3 = vpop.f32.mrb[11].mxu0 }
 0x5f0   :  { %v870_v3 = vsub.s32 2, %v2707_v31 }
 0x5f1   :  { %2408 = vrot.lane.b32.xlu0 %v2407_v2, %s2605_s11 }
 0x5f4   :  { %v736_v4 = vpop.f32.mrb[12].mxu0 }
 0x5f5   :  { %v2234_v5 = vpop.f32.mrb[13].mxu0 }
 0x5f6   :  { %v739_v6 = vpop.f32.mrb[14].mxu0  ;;  %v871_v5 = vrot.slane %v2713_v33, %v870_v3 }
 0x5f7   :  { %v2412_v7 = vpack.i.bf16 %v739_v6, %v736_v4  ;;  %v2235_v8 = vpop.f32.mrb[15].mxu0 }
 0x5f9   :  { %2413 = vrot.lane.b32.xlu1 %v2412_v7, %s2606_s12  ;;  %v876_v7 = vsub.s32 3, %v2707_v31 }
 0x65b   :  { %v2404_v9 = vpop.permute.xlu1 %2403 }
 0x65c   :  { %v2406_v12 = vunpack.i.h.bf16 %v2404_v9  ;;  %v2405_v13 = vunpack.i.l.bf16 %v2404_v9 }
 0x65e   :  { %v768_v17 = vsel %vm253_vm5, %v370_v52, %v2406_v12  ;;  %v767_v18 = vsel %vm253_vm5, %v367_v50, %v2405_v13  ;;  %v2436_v52 = vld [vmem:[#allocation2 + $0x20] sm:$0xff]   ;;  %v877_v12 = vrot.slane %v2713_v33, %v876_v7 }
 0x65f   :  { %2245 = vmatpush3.bf16.msra.mxu0 %v2436_v52 }
 0x660   :  { %2246 = vmatprep.subr.bf16.mxu0 %v2592_v10 }
 0x663   :  { %v2409_v11 = vpop.permute.xlu0 %2408 }
 0x664   :  { %v2411_v14 = vunpack.i.h.bf16 %v2409_v11  ;;  %v2410_v15 = vunpack.i.l.bf16 %v2409_v11 }
 0x666   :  { %v769_v21 = vsel %vm303_vm7, %v767_v18, %v2410_v15  ;;  %v770_v22 = vsel %vm303_vm7, %v768_v17, %v2411_v14  ;;  %v2444_v17 = vld [vmem:[#allocation2 + $0x60] sm:$0xff]   ;;  %v2445_v18 = vld [vmem:[#allocation2 + $0x68] sm:$0xff]  }
 0x66b   :  { %v2414_v16 = vpop.permute.xlu1 %2413 }
 0x66c   :  { %v2416_v19 = vunpack.i.h.bf16 %v2414_v16  ;;  %v2415_v20 = vunpack.i.l.bf16 %v2414_v16 }
 0x66e   :  { %v772_v41 = vsel %vm771_vm9, %v769_v21, %v2415_v20  ;;  %v773_v23 = vsel %vm771_vm9, %v770_v22, %v2416_v19  ;;  %v887_v19 = vsub.s32 4, %v2707_v31 }
 0x66f   :  { %v774_v24 = vpack.c.bf16 %v773_v23, %v772_v41 }
 0x670   :  { %v888_v20 = vrot.slane %v2713_v33, %v887_v19 }
 0x671   :  { %2241 = vmatmul.mubr.msk.bf16.vlgmr.msra.gmra.mrb[24].mxu1 %vm204_vm4, %v774_v24 }
 0x672   :  { %2268 = vmatprep.mubr.msk.bf16.mxu1 %vm2593_vm3, %v2592_v10  ;;  %2253 = vmatpush3.bf16.msra.mxu1 %v2438_v53 }
 0x673   :  { %2254 = vmatprep.subr.bf16.mxu1 %v2592_v10 }
 0x676   :  { %2255 = vmatpush3.bf16.msra.mxu1 %v2439_v54 }
 0x677   :  { %2256 = vmatprep.subr.bf16.mxu1 %v2592_v10 }
 0x67a   :  { %2257 = vmatpush3.bf16.msra.mxu1 %v2440_v55 }
 0x67b   :  { %2258 = vmatprep.subr.bf16.mxu1 %v2592_v10 }
 0x67e   :  { %2259 = vmatpush3.bf16.msra.mxu1 %v2441_v56  ;;  %v2446_v56 = vld [vmem:[#allocation2 + $0x70] sm:$0xff]  }
 0x67f   :  { %2260 = vmatprep.subr.bf16.mxu1 %v2592_v10 }
 0x682   :  { %2261 = vmatpush3.bf16.msra.mxu1 %v2442_v59  ;;  %v2447_v59 = vld [vmem:[#allocation2 + $0x78] sm:$0xff]  }
 0x683   :  { %2262 = vmatprep.subr.bf16.mxu1 %v2592_v10 }
 0x686   :  { %2263 = vmatpush3.bf16.msra.mxu1 %v2443_v60 }
 0x687   :  { %2264 = vmatprep.subr.bf16.mxu1 %v2592_v10 }
 0x68a   :  { %2265 = vmatpush3.bf16.msra.mxu1 %v2444_v17 }
 0x68b   :  { %2266 = vmatprep.subr.bf16.mxu1 %v2592_v10 }
 0x68e   :  { %2267 = vmatpush3.bf16.msra.mxu1 %v2445_v18  ;;  %v2911_v18 = vld [vmem:[%s3087_s3 + $0x8] sm:$0xff]  ;;  %s2607_s3 = smov [#allocation5]  }
 0x68f   :  { %2298 = vmatprep.subr.bf16.mxu1 %v2592_v10 }
 0x744   :  { %v832_v28 = vpop.f32.mrb[24].mxu1 }
 0x745   :  { %v833_v30 = vadd.f32 %v832_v28, %v782_v26  ;;  %v2242_v34 = vpop.f32.mrb[25].mxu1 }
 0x746   :  { %v835_v35 = vpop.f32.mrb[26].mxu1 }
 0x747   :  { %v836_v36 = vadd.f32 %v835_v35, %v782_v26  ;;  %v2243_v37 = vpop.f32.mrb[27].mxu1  ;;  %v839_v38 = vadd.f32 %v833_v30, %v2700_v29  ;;  %v966_v35 = vsub.s32 5, %v2707_v31 }
 0x749   :  { %v841_v39 = vsel %vm204_vm4, %v839_v38, 0.0  ;;  %v840_v40 = vadd.f32 %v836_v36, %v2698_v27  ;;  %v2437_v27 = vld [vmem:[#allocation2 + $0x28] sm:$0xff]   ;;  %v967_v36 = vrot.slane %v2713_v33, %v966_v35 }
 0x74a   :  { %842 = vadd.xlane.f32.xlu0 %v841_v39  ;;  %2247 = vmatpush3.bf16.msra.mxu0 %v2437_v27 }
 0x74b   :  { %v844_v42 = vsel %vm204_vm4, %v840_v40, 0.0  ;;  %2272 = vmatprep.subr.bf16.mxu0 %v2592_v10 }
 0x74c   :  { %845 = vadd.xlane.f32.xlu1 %v844_v42 }
 0x7d7   :  { %v843_v43 = vpop.xlane.xlu0 %842 }
 0x7d8   :  { %v848_v44 = vmul.f32 0.03125, %v843_v43 }
 0x7d9   :  { %v846_v45 = vpop.xlane.xlu1 %845 }
 0x7da   :  { %v850_v46 = vsub.f32 %v839_v38, %v848_v44  ;;  %v849_v47 = vmul.f32 0.03125, %v846_v45 }
 0x7dc   :  { %v851_v48 = vsub.f32 %v840_v40, %v849_v47  ;;  %v852_v49 = vmul.f32 %v850_v46, %v850_v46 }
 0x7de   :  { %v854_v50 = vsel %vm204_vm4, %v852_v49, 0.0  ;;  %v853_v51 = vmul.f32 %v851_v48, %v851_v48 }
 0x7df   :  { %855 = vadd.xlane.f32.xlu0 %v854_v50 }
 0x7e0   :  { %v857_v29 = vsel %vm204_vm4, %v853_v51, 0.0 }
 0x7e3   :  { %858 = vadd.xlane.f32.xlu0 %v857_v29 }
 0x86c   :  { %v856_v61 = vpop.xlane.xlu0 %855 }
 0x86d   :  { %v860_v62 = vmul.f32 0.03125, %v856_v61 }
 0x86f   :  { %v862_v63 = vadd.f32 1e-05, %v860_v62 }
 0x870   :  { %v859_v0 = vpop.xlane.xlu0 %858 }
 0x871   :  { %2492 = vrsqrt.f32 %v862_v63  ;;  %v861_v1 = vmul.f32 0.03125, %v859_v0 }
 0x873   :  { %v863_v2 = vadd.f32 1e-05, %v861_v1 }
 0x875   :  { %2494 = vrsqrt.f32 %v863_v2  ;;  %v1087_v2 = vsub.s32 6, %v2707_v31 }
 0x87b   :  { %v2493_v4 = vpop.eup %2492 }
 0x87c   :  { %v866_v6 = vmul.f32 %v2493_v4, %v850_v46  ;;  %v1088_v4 = vrot.slane %v2713_v33, %v1087_v2 }
 0x87e   :  { %v872_v9 = vmul.f32 %v871_v5, %v866_v6 }
 0x87f   :  { %v2495_v8 = vpop.eup %2494 }
 0x880   :  { %v867_v11 = vmul.f32 %v2495_v8, %v851_v48  ;;  %v878_v14 = vadd.f32 %v877_v12, %v872_v9 }
 0x882   :  { %v873_v13 = vmul.f32 %v871_v5, %v867_v11  ;;  %v1093_v5 = vsub.s32 7, %v2707_v31 }
 0x884   :  { %v879_v15 = vadd.f32 %v877_v12, %v873_v13  ;;  %v1094_v13 = vrot.slane %v2713_v33, %v1093_v5  ;;  %v1108_v33 = vrot.slane %v2911_v18, %v190_v32 }
 0x886   :  { %v880_v16 = vpack.c.bf16 %v879_v15, %v878_v14 }
 0x888   :  { %2249 = vmatmul.mubr.msk.bf16.vlgmr.msra.gmra.mrb[16].mxu0 %vm204_vm4, %v880_v16 }
 0x889   :  { %2276 = vmatprep.mubr.msk.bf16.mxu0 %vm2593_vm3, %v2592_v10  ;;  %2273 = vmatpush3.bf16.msra.mxu0 %v2446_v56 }
 0x88a   :  { %2274 = vmatprep.subr.bf16.mxu0 %v2592_v10 }
 0x88d   :  { %2275 = vmatpush3.bf16.msra.mxu0 %v2447_v59 }
 0x88e   :  { %2280 = vmatprep.subr.bf16.mxu0 %v2592_v10 }
 0x95b   :  { %v938_v21 = vpop.f32.mrb[16].mxu0 }
 0x95c   :  { %v939_v22 = vadd.f32 %v938_v21, %v888_v20  ;;  %v2250_v41 = vpop.f32.mrb[17].mxu0 }
 0x95d   :  { %v941_v23 = vpop.f32.mrb[18].mxu0 }
 0x95e   :  { %v942_v24 = vadd.f32 %v941_v23, %v888_v20  ;;  %v2251_v26 = vpop.f32.mrb[19].mxu0  ;;  %v945_v28 = vmax.f32 %v939_v22, 0.0 }
 0x960   :  { %v946_v30 = vmax.f32 %v942_v24, 0.0 }
 0x962   :  { %v947_v34 = vpack.c.bf16 %v946_v30, %v945_v28 }
 0x964   :  { %2269 = vmatmul.mubr.bf16.vlgmr.msra.gmra.mrb[28].mxu1 %v947_v34 }
 0x965   :  { %2300 = vmatprep.mubr.msk.bf16.mxu1 %vm2593_vm3, %v2592_v10 }
 0xa37   :  { %v1050_v37 = vpop.f32.mrb[28].mxu1 }
 0xa38   :  { %v1051_v38 = vadd.f32 %v1050_v37, %v967_v36  ;;  %v2270_v39 = vpop.f32.mrb[29].mxu1 }
 0xa39   :  { %v1053_v40 = vpop.f32.mrb[30].mxu1 }
 0xa3a   :  { %v1054_v42 = vadd.f32 %v1053_v40, %v967_v36  ;;  %v2271_v43 = vpop.f32.mrb[31].mxu1  ;;  %v1057_v44 = vadd.f32 %v1051_v38, %v878_v14 }
 0xa3c   :  { %v1059_v45 = vsel %vm204_vm4, %v1057_v44, 0.0  ;;  %v1058_v46 = vadd.f32 %v1054_v42, %v879_v15 }
 0xa3d   :  { %1060 = vadd.xlane.f32.xlu1 %v1059_v45 }
 0xa3e   :  { %v1062_v47 = vsel %vm204_vm4, %v1058_v46, 0.0 }
 0xa3f   :  { %1063 = vadd.xlane.f32.xlu0 %v1062_v47 }
 0xaca   :  { %v1061_v48 = vpop.xlane.xlu1 %1060 }
 0xacb   :  { %v1065_v49 = vmul.f32 0.03125, %v1061_v48 }
 0xacc   :  { %v1064_v50 = vpop.xlane.xlu0 %1063 }
 0xacd   :  { %v1067_v51 = vsub.f32 %v1057_v44, %v1065_v49  ;;  %v1066_v29 = vmul.f32 0.03125, %v1064_v50 }
 0xacf   :  { %v1068_v52 = vsub.f32 %v1058_v46, %v1066_v29  ;;  %v1069_v27 = vmul.f32 %v1067_v51, %v1067_v51 }
 0xad1   :  { %v1071_v53 = vsel %vm204_vm4, %v1069_v27, 0.0  ;;  %v1070_v54 = vmul.f32 %v1068_v52, %v1068_v52 }
 0xad2   :  { %1072 = vadd.xlane.f32.xlu1 %v1071_v53 }
 0xad3   :  { %v1074_v55 = vsel %vm204_vm4, %v1070_v54, 0.0 }
 0xad4   :  { %1075 = vadd.xlane.f32.xlu0 %v1074_v55 }
 0xb5f   :  { %v1073_v60 = vpop.xlane.xlu1 %1072 }
 0xb60   :  { %v1077_v61 = vmul.f32 0.03125, %v1073_v60 }
 0xb61   :  { %v1076_v62 = vpop.xlane.xlu0 %1075 }
 0xb62   :  { %v1079_v63 = vadd.f32 1e-05, %v1077_v61  ;;  %v1078_v0 = vmul.f32 0.03125, %v1076_v62 }
 0xb64   :  { %2496 = vrsqrt.f32 %v1079_v63  ;;  %v1080_v1 = vadd.f32 1e-05, %v1078_v0 }
 0xb66   :  { %2498 = vrsqrt.f32 %v1080_v1 }
 0xb6e   :  { %v2497_v6 = vpop.eup %2496 }
 0xb6f   :  { %v1083_v8 = vmul.f32 %v2497_v6, %v1067_v51 }
 0xb70   :  { %v2499_v9 = vpop.eup %2498 }
 0xb71   :  { %v1089_v11 = vmul.f32 %v1088_v4, %v1083_v8  ;;  %v1084_v12 = vmul.f32 %v2499_v9, %v1068_v52 }
 0xb73   :  { %v1090_v14 = vmul.f32 %v1088_v4, %v1084_v12  ;;  %v2899_v15 = vadd.f32 %v1094_v13, %v1089_v11 }
 0xb75   :  { %v2901_v16 = vadd.f32 %v1094_v13, %v1090_v14 }
 0xb77   :  { %v1099_v17 = vpack.c.bf16 %v2901_v16, %v2899_v15 }
 0xb79   :  { %2277 = vmatmul.mubr.msk.bf16.vlgmr.msra.gmra.mrb[20].mxu0 %vm204_vm4, %v1099_v17 }
 0xb7a   :  { %2282 = vmatprep.mubr.msk.bf16.mxu0 %vm2593_vm3, %v2592_v10 }
 0xc4c   :  { %v1158_v20 = vpop.f32.mrb[20].mxu0 }
 0xc4d   :  { %v2278_v21 = vpop.f32.mrb[21].mxu0  ;;  %v1159_v41 = vadd.f32 %v1158_v20, %v1108_v33 }
 0xc4e   :  { %v1161_v22 = vpop.f32.mrb[22].mxu0 }
 0xc4f   :  { %v1162_v23 = vadd.f32 %v1161_v22, %v1108_v33  ;;  %v2279_v24 = vpop.f32.mrb[23].mxu0 }
 0xc51   :  { %v2916_v26 = vpack.c.bf16 %v1162_v23, %v1159_v41 }
 0xc53   :  { %1167 = vrot.lane.b32.xlu1 %v2916_v26, %s2595_s28 }
 0xc57   :  { %1241 = vrot.lane.b32.xlu1 %v2916_v26, %s2589_s25  ;;  %s2016_s25 = sshll.u32 %s2607_s3, 4  ;;  %s2017_s25 = int_to_ptr.vmem [resolvable:$true] %s2016_s25 }
 0xc58   :  { %s2562_s15 = scalar_lea.vmem %s2017_s25, 256  ;;  %p2567_p9 = scmp.lt.s32.totalorder %s2017_s25, %s2017_s25 }
 0xc59   :  { %p2563_p8 = scmp.ne.s32.totalorder %s2017_s25, %s2562_s15  ;;  %p2568_p10 = scmp.lt.s32.totalorder %s2562_s15, %s2562_s15 }
 0xc5b   :  { %1288 = vrot.lane.b32.xlu1 %v2916_v26, %s2594_s27  ;;  %p2569_p11 = por %p2568_p10, %p2567_p9 }
 0xc5d   :  { %p2570_p12 = pnand %p2569_p11, %p2563_p8 }
 0xc5f   :  { %1413 = vrot.lane.b32.xlu1 %v2916_v26, %s2599_s6 }
 0xc63   :  { %1411 = vrot.lane.b32.xlu1 %v2916_v26, %s2596_s29 }
 0xc67   :  { %1536 = vrot.lane.b32.xlu1 %v2916_v26, %s2600_s7 }
 0xc6b   :  { %1534 = vrot.lane.b32.xlu1 %v2916_v26, %s2598_s5 }
 0xcc5   :  { %v1168_v32 = vpop.permute.xlu1 %1167 }
 0xcc6   :  { %v1173_v28 = vsel %vm253_vm5, %v1168_v32, 0 }
 0xcc7   :  { %2281 = vmatpush3.bf16.xpose.msra.mxu0 %v1173_v28 }
 0xcc8   :  { %2286 = vmatprep.subr.bf16.mxu0 %v2592_v10 }
 0xcc9   :  { %v1242_v30 = vpop.permute.xlu1 %1241 }
 0xccd   :  { %v1289_v56 = vpop.permute.xlu1 %1288 }
 0xcce   :  { %2283 = vmatmul.mubr.msk.bf16.vlgmr.msra.gmra.mrb[24].mxu0 %vm253_vm5, %v2916_v26 }
 0xccf   :  { %2287 = vmatpush3.bf16.msra.mxu0 %v1242_v30  ;;  %2288 = vmatprep.mubr.msk.bf16.mxu0 %vm2593_vm3, %v2592_v10 }
 0xcd0   :  { %2292 = vmatprep.subr.bf16.mxu0 %v2592_v10 }
 0xcd1   :  { %v1414_v0 = vpop.permute.xlu1 %1413 }
 0xcd2   :  { %v1419_v4 = vsel %vm253_vm5, %v1414_v0, 0 }
 0xcd5   :  { %v1412_v1 = vpop.permute.xlu1 %1411 }
 0xcd9   :  { %v1537_v6 = vpop.permute.xlu1 %1536 }
 0xcda   :  { %v1542_v8 = vsel %vm253_vm5, %v1537_v6, 0 }
 0xcdd   :  { %v1535_v9 = vpop.permute.xlu1 %1534 }
 0xda1   :  { %v1209_v34 = vpop.f32.mrb[24].mxu0 }
 0xda2   :  { %v1216_v36 = vsel %vm2758_vm6, %v1209_v34, -1e+30  ;;  %v2284_v37 = vpop.f32.mrb[25].mxu0 }
 0xda3   :  { %v1212_v38 = vpop.f32.mrb[26].mxu0  ;;  %v1218_v39 = vsel %vm303_vm7, %v1216_v36, -inf }
 0xda4   :  { %v1217_v40 = vsel %vm2762_vm8, %v1212_v38, -1e+30  ;;  %1219 = vmax.xlane.f32.xlu0 %v1218_v39  ;;  %v2285_v42 = vpop.f32.mrb[27].mxu0 }
 0xda5   :  { %v1221_v43 = vsel %vm303_vm7, %v1217_v40, -inf }
 0xda8   :  { %1222 = vmax.xlane.f32.xlu0 %v1221_v43 }
 0xe31   :  { %v1220_v44 = vpop.xlane.xlu0 %1219 }
 0xe32   :  { %v1224_v45 = vsub.f32 %v1216_v36, %v1220_v44 }
 0xe34   :  { %v1226_v46 = vmul.f32 1.442695, %v1224_v45 }
 0xe35   :  { %v1223_v47 = vpop.xlane.xlu0 %1222 }
 0xe36   :  { %2500 = vpow2.f32 %v1226_v46  ;;  %v1225_v48 = vsub.f32 %v1217_v40, %v1223_v47 }
 0xe38   :  { %v1228_v49 = vmul.f32 1.442695, %v1225_v48 }
 0xe3a   :  { %2502 = vpow2.f32 %v1228_v49 }
 0xe40   :  { %v2501_v50 = vpop.eup %2500 }
 0xe41   :  { %v1230_v51 = vsel %vm303_vm7, %v2501_v50, 0.0 }
 0xe42   :  { %1231 = vadd.xlane.f32.xlu0 %v1230_v51 }
 0xe44   :  { %v2503_v29 = vpop.eup %2502 }
 0xe45   :  { %v1233_v52 = vsel %vm303_vm7, %v2503_v29, 0.0 }
 0xe46   :  { %1234 = vadd.xlane.f32.xlu0 %v1233_v52 }
 0xe5c   :  { %1290 = vrot.lane.b32.xlu0 %v2916_v26, %s2597_s30 }
 0xecf   :  { %v1232_v27 = vpop.xlane.xlu0 %1231 }
 0xed0   :  { %2504 = vrcp.f32 %v1232_v27 }
 0xed3   :  { %v1235_v53 = vpop.xlane.xlu0 %1234 }
 0xed4   :  { %2506 = vrcp.f32 %v1235_v53 }
 0xed7   :  { %v1291_v61 = vpop.permute.xlu0 %1290 }
 0xed8   :  { %v1296_v63 = vsel %vm253_vm5, %v1291_v61, 0 }
 0xeda   :  { %v2505_v54 = vpop.eup %2504 }
 0xedb   :  { %v1238_v59 = vmul.f32 %v2505_v54, %v2501_v50 }
 0xede   :  { %v2507_v55 = vpop.eup %2506 }
 0xedf   :  { %v1239_v60 = vmul.f32 %v2507_v55, %v2503_v29 }
 0xee1   :  { %v1240_v62 = vpack.c.bf16 %v1239_v60, %v1238_v59 }
 0xee3   :  { %2289 = vmatmul.mubr.msk.bf16.vlgmr.msra.gmra.mrb[28].mxu0 %vm303_vm7, %v1240_v62 }
 0xee4   :  { %2293 = vmatpush3.bf16.xpose.msra.mxu0 %v1296_v63  ;;  %2294 = vmatprep.mubr.msk.bf16.mxu0 %vm2593_vm3, %v2592_v10 }
 0xee5   :  { %2304 = vmatprep.subr.bf16.mxu0 %v2592_v10 }
 0xeeb   :  { %2295 = vmatmul.mubr.msk.bf16.vlgmr.msra.gmra.mrb[32].mxu0 %vm253_vm5, %v1289_v56 }
 0xeec   :  { %2305 = vmatpush3.bf16.xpose.msra.mxu0 %v1419_v4  ;;  %2306 = vmatprep.mubr.msk.bf16.mxu0 %vm2593_vm3, %v2592_v10 }
 0xeed   :  { %2316 = vmatprep.subr.bf16.mxu0 %v2592_v10 }
 0xef3   :  { %2307 = vmatmul.mubr.msk.bf16.vlgmr.msra.gmra.mrb[36].mxu0 %vm253_vm5, %v1412_v1 }
 0xef4   :  { %2317 = vmatpush3.bf16.xpose.msra.mxu0 %v1542_v8  ;;  %2318 = vmatprep.mubr.msk.bf16.mxu0 %vm2593_vm3, %v2592_v10 }
 0xef5   :  { %2328 = vmatprep.subr.bf16.mxu0 %v2592_v10 }
 0xefb   :  { %2319 = vmatmul.mubr.msk.bf16.vlgmr.msra.gmra.mrb[40].mxu0 %vm253_vm5, %v1535_v9 }
 0xefc   :  { %2332 = vmatprep.mubr.msk.bf16.mxu0 %vm2593_vm3, %v2592_v10 }
 0xfb6   :  { %v2967_v11 = vpop.f32.mrb[28].mxu0 }
 0xfb7   :  { %v2290_v12 = vpop.f32.mrb[29].mxu0 }
 0xfb8   :  { %v2969_v13 = vpop.f32.mrb[30].mxu0 }
 0xfb9   :  { %v2291_v14 = vpop.f32.mrb[31].mxu0 }
 0xfbe   :  { %v1332_v17 = vpop.f32.mrb[32].mxu0 }
 0xfbf   :  { %v1339_v33 = vsel %vm2758_vm6, %v1332_v17, -1e+30  ;;  %v2296_v20 = vpop.f32.mrb[33].mxu0 }
 0xfc0   :  { %v1335_v21 = vpop.f32.mrb[34].mxu0  ;;  %v1341_v22 = vsel %vm303_vm7, %v1339_v33, -inf }
 0xfc1   :  { %v1340_v41 = vsel %vm2762_vm8, %v1335_v21, -1e+30  ;;  %1342 = vmax.xlane.f32.xlu0 %v1341_v22  ;;  %v2297_v23 = vpop.f32.mrb[35].mxu0 }
 0xfc2   :  { %v1344_v24 = vsel %vm303_vm7, %v1340_v41, -inf }
 0xfc3   :  { %1345 = vmax.xlane.f32.xlu1 %v1344_v24 }
 0xfc6   :  { %v1455_v32 = vpop.f32.mrb[36].mxu0 }
 0xfc7   :  { %v1462_v28 = vsel %vm2758_vm6, %v1455_v32, -1e+30  ;;  %v2308_v30 = vpop.f32.mrb[37].mxu0 }
 0xfc8   :  { %v1458_v34 = vpop.f32.mrb[38].mxu0  ;;  %v1464_v36 = vsel %vm303_vm7, %v1462_v28, -inf }
 0xfc9   :  { %v1463_v37 = vsel %vm2762_vm8, %v1458_v34, -1e+30  ;;  %1465 = vmax.xlane.f32.xlu0 %v1464_v36  ;;  %v2309_v38 = vpop.f32.mrb[39].mxu0 }
 0xfca   :  { %v1467_v39 = vsel %vm303_vm7, %v1463_v37, -inf }
 0xfcd   :  { %1468 = vmax.xlane.f32.xlu0 %v1467_v39 }
 0xfce   :  { %v1578_v40 = vpop.f32.mrb[40].mxu0 }
 0xfcf   :  { %v1585_v42 = vsel %vm2758_vm6, %v1578_v40, -1e+30  ;;  %v2320_v43 = vpop.f32.mrb[41].mxu0 }
 0xfd0   :  { %v1581_v44 = vpop.f32.mrb[42].mxu0  ;;  %v1587_v45 = vsel %vm303_vm7, %v1585_v42, -inf }
 0xfd1   :  { %v1586_v46 = vsel %vm2762_vm8, %v1581_v44, -1e+30  ;;  %1588 = vmax.xlane.f32.xlu1 %v1587_v45  ;;  %v2321_v47 = vpop.f32.mrb[43].mxu0 }
 0xfd2   :  { %v1590_v48 = vsel %vm303_vm7, %v1586_v46, -inf }
 0xfd3   :  { %1591 = vmax.xlane.f32.xlu0 %v1590_v48 }
 0xfe2   :  { %1364 = vrot.lane.b32.xlu1 %v2916_v26, %s2601_s8 }
0x104e   :  { %v1343_v49 = vpop.xlane.xlu0 %1342 }
0x104f   :  { %v1347_v50 = vsub.f32 %v1339_v33, %v1343_v49 }
0x1050   :  { %v1346_v51 = vpop.xlane.xlu1 %1345 }
0x1051   :  { %v1349_v57 = vmul.f32 1.442695, %v1347_v50  ;;  %v1348_v29 = vsub.f32 %v1340_v41, %v1346_v51 }
0x1053   :  { %2508 = vpow2.f32 %v1349_v57  ;;  %v1351_v52 = vmul.f32 1.442695, %v1348_v29 }
0x1055   :  { %2510 = vpow2.f32 %v1351_v52 }
0x1056   :  { %v1466_v27 = vpop.xlane.xlu0 %1465 }
0x1057   :  { %v1470_v53 = vsub.f32 %v1462_v28, %v1466_v27 }
0x1059   :  { %v1472_v58 = vmul.f32 1.442695, %v1470_v53 }
0x105a   :  { %v1469_v54 = vpop.xlane.xlu0 %1468 }
0x105b   :  { %2512 = vpow2.f32 %v1472_v58  ;;  %v1471_v55 = vsub.f32 %v1463_v37, %v1469_v54  ;;  %v2448_v54 = vld [vmem:[#allocation2 + $0x80] sm:$0xff]  }
0x105c   :  { %2329 = vmatpush3.bf16.msra.mxu0 %v2448_v54  ;;  %v2456_v54 = vld [vmem:[#allocation2 + $0xc0] sm:$0xff]  }
0x105d   :  { %v2509_v56 = vpop.eup %2508  ;;  %v1474_v59 = vmul.f32 1.442695, %v1471_v55  ;;  %2330 = vmatprep.subr.bf16.mxu0 %v2592_v10 }
0x105e   :  { %v1589_v60 = vpop.xlane.xlu1 %1588  ;;  %v1353_v61 = vsel %vm303_vm7, %v2509_v56, 0.0 }
0x105f   :  { %v2511_v62 = vpop.eup %2510  ;;  %2514 = vpow2.f32 %v1474_v59  ;;  %v1593_v63 = vsub.f32 %v1585_v42, %v1589_v60  ;;  %1354 = vadd.xlane.f32.xlu1 %v1353_v61  ;;  %v2449_v59 = vld [vmem:[#allocation2 + $0x88] sm:$0xff]  }
0x1060   :  { %v1592_v0 = vpop.xlane.xlu0 %1591  ;;  %v1356_v1 = vsel %vm303_vm7, %v2511_v62, 0.0  ;;  %2331 = vmatpush3.bf16.msra.mxu0 %v2449_v59 }
0x1061   :  { %v1595_v4 = vmul.f32 1.442695, %v1593_v63  ;;  %v1594_v6 = vsub.f32 %v1586_v46, %v1592_v0  ;;  %1357 = vadd.xlane.f32.xlu0 %v1356_v1  ;;  %2344 = vmatprep.subr.bf16.mxu0 %v2592_v10 }
0x1062   :  { %v1365_v8 = vpop.permute.xlu1 %1364 }
0x1063   :  { %2516 = vpow2.f32 %v1595_v4  ;;  %v1597_v9 = vmul.f32 1.442695, %v1594_v6  ;;  %2299 = vmatpush3.bf16.msra.mxu1 %v1365_v8 }
0x1064   :  { %2310 = vmatprep.subr.bf16.mxu1 %v2592_v10 }
0x1065   :  { %v2513_v12 = vpop.eup %2512  ;;  %2518 = vpow2.f32 %v1597_v9 }
0x1066   :  { %v1476_v14 = vsel %vm303_vm7, %v2513_v12, 0.0 }
0x1067   :  { %1477 = vadd.xlane.f32.xlu1 %v1476_v14 }
0x1069   :  { %v2515_v17 = vpop.eup %2514 }
0x106a   :  { %v1479_v33 = vsel %vm303_vm7, %v2515_v17, 0.0 }
0x106b   :  { %1480 = vadd.xlane.f32.xlu0 %v1479_v33 }
0x106d   :  { %v2517_v20 = vpop.eup %2516 }
0x106e   :  { %v1599_v21 = vsel %vm303_vm7, %v2517_v20, 0.0 }
0x106f   :  { %v2519_v22 = vpop.eup %2518  ;;  %1600 = vadd.xlane.f32.xlu1 %v1599_v21 }
0x1070   :  { %v1602_v41 = vsel %vm303_vm7, %v2519_v22, 0.0 }
0x1071   :  { %1603 = vadd.xlane.f32.xlu0 %v1602_v41 }
0x1080   :  { %1610 = vrot.lane.b32.xlu1 %v2916_v26, %s2603_s10 }
0x1087   :  { %1487 = vrot.lane.b32.xlu0 %v2916_v26, %s2602_s9 }
0x10ec   :  { %v1355_v23 = vpop.xlane.xlu1 %1354 }
0x10ed   :  { %2520 = vrcp.f32 %v1355_v23 }
0x10ee   :  { %v1358_v24 = vpop.xlane.xlu0 %1357 }
0x10ef   :  { %2522 = vrcp.f32 %v1358_v24 }
0x10f4   :  { %v1478_v32 = vpop.xlane.xlu1 %1477 }
0x10f5   :  { %2524 = vrcp.f32 %v1478_v32 }
0x10f7   :  { %v2521_v28 = vpop.eup %2520 }
0x10f8   :  { %v1481_v30 = vpop.xlane.xlu0 %1480  ;;  %v1361_v36 = vmul.f32 %v2521_v28, %v2509_v56 }
0x10f9   :  { %v2523_v34 = vpop.eup %2522  ;;  %2526 = vrcp.f32 %v1481_v30 }
0x10fa   :  { %v1362_v37 = vmul.f32 %v2523_v34, %v2511_v62 }
0x10fc   :  { %v1601_v38 = vpop.xlane.xlu1 %1600  ;;  %v1363_v39 = vpack.c.bf16 %v1362_v37, %v1361_v36 }
0x10fd   :  { %2528 = vrcp.f32 %v1601_v38 }
0x10fe   :  { %2301 = vmatmul.mubr.msk.bf16.vlgmr.msra.gmra.mrb[32].mxu1 %vm303_vm7, %v1363_v39  ;;  %v1604_v40 = vpop.xlane.xlu0 %1603 }
0x10ff   :  { %2530 = vrcp.f32 %v1604_v40  ;;  %2312 = vmatprep.mubr.msk.bf16.mxu1 %vm2593_vm3, %v2592_v10  ;;  %v2525_v26 = vpop.eup %2524 }
0x1100   :  { %v1484_v44 = vmul.f32 %v2525_v26, %v2513_v12  ;;  %v1611_v48 = vpop.permute.xlu1 %1610 }
0x1102   :  { %v1488_v42 = vpop.permute.xlu0 %1487 }
0x1103   :  { %v2527_v43 = vpop.eup %2526  ;;  %2311 = vmatpush3.bf16.msra.mxu1 %v1488_v42 }
0x1104   :  { %v1485_v45 = vmul.f32 %v2527_v43, %v2515_v17  ;;  %2322 = vmatprep.subr.bf16.mxu1 %v2592_v10 }
0x1106   :  { %v1486_v46 = vpack.c.bf16 %v1485_v45, %v1484_v44 }
0x1107   :  { %v2529_v47 = vpop.eup %2528 }
0x1108   :  { %2313 = vmatmul.mubr.msk.bf16.vlgmr.msra.gmra.mrb[36].mxu1 %vm303_vm7, %v1486_v46  ;;  %v1607_v51 = vmul.f32 %v2529_v47, %v2517_v20 }
0x1109   :  { %v2531_v49 = vpop.eup %2530  ;;  %2323 = vmatpush3.bf16.msra.mxu1 %v1611_v48  ;;  %2324 = vmatprep.mubr.msk.bf16.mxu1 %vm2593_vm3, %v2592_v10 }
0x110a   :  { %v1608_v50 = vmul.f32 %v2531_v49, %v2519_v22  ;;  %2336 = vmatprep.subr.bf16.mxu1 %v2592_v10 }
0x110c   :  { %v1609_v57 = vpack.c.bf16 %v1608_v50, %v1607_v51 }
0x1110   :  { %2325 = vmatmul.mubr.msk.bf16.vlgmr.msra.gmra.mrb[40].mxu1 %vm303_vm7, %v1609_v57 }
0x1111   :  { %2340 = vmatprep.mubr.msk.bf16.mxu1 %vm2593_vm3, %v2592_v10 }
0x11d1   :  { %v1404_v29 = vpop.f32.mrb[32].mxu1 }
0x11d2   :  { %v2302_v52 = vpop.f32.mrb[33].mxu1 }
0x11d3   :  { %v1407_v27 = vpop.f32.mrb[34].mxu1  ;;  %v2452_v52 = vld [vmem:[#allocation2 + $0xa0] sm:$0xff]  }
0x11d4   :  { %v2417_v53 = vpack.i.bf16 %v1407_v27, %v1404_v29  ;;  %v2303_v58 = vpop.f32.mrb[35].mxu1  ;;  %v2450_v29 = vld [vmem:[#allocation2 + $0x90] sm:$0xff]   ;;  %v2453_v27 = vld [vmem:[#allocation2 + $0xa8] sm:$0xff]  }
0x11d5   :  { %2337 = vmatpush3.bf16.msra.mxu1 %v2450_v29  ;;  %v2455_v58 = vld [vmem:[#allocation2 + $0xb8] sm:$0xff]  }
0x11d6   :  { %2418 = vrot.lane.b32.xlu1 %v2417_v53, %s2604_s2  ;;  %2338 = vmatprep.subr.bf16.mxu1 %v2592_v10  ;;  %v2454_v53 = vld [vmem:[#allocation2 + $0xb0] sm:$0xff]  }
0x11db   :  { %v1527_v55 = vpop.f32.mrb[36].mxu1 }
0x11dc   :  { %v2314_v56 = vpop.f32.mrb[37].mxu1 }
0x11dd   :  { %v1530_v60 = vpop.f32.mrb[38].mxu1 }
0x11de   :  { %v2422_v61 = vpack.i.bf16 %v1530_v60, %v1527_v55  ;;  %v2315_v62 = vpop.f32.mrb[39].mxu1  ;;  %v2457_v55 = vld [vmem:[#allocation2 + $0xc8] sm:$0xff]  }
0x11e0   :  { %2423 = vrot.lane.b32.xlu0 %v2422_v61, %s2605_s11 }
0x11e3   :  { %v1650_v63 = vpop.f32.mrb[40].mxu1 }
0x11e4   :  { %v2326_v0 = vpop.f32.mrb[41].mxu1 }
0x11e5   :  { %v1653_v1 = vpop.f32.mrb[42].mxu1 }
0x11e6   :  { %v2427_v4 = vpack.i.bf16 %v1653_v1, %v1650_v63  ;;  %v2327_v6 = vpop.f32.mrb[43].mxu1  ;;  %v1783_v1 = vrot.slane %v2911_v18, %v870_v3  ;;  %v1800_v3 = vrot.slane %v2911_v18, %v887_v19 }
0x11e8   :  { %2428 = vrot.lane.b32.xlu1 %v2427_v4, %s2606_s12 }
0x1248   :  { %v2419_v8 = vpop.permute.xlu1 %2418 }
0x1249   :  { %v2421_v12 = vunpack.i.h.bf16 %v2419_v8  ;;  %v2420_v14 = vunpack.i.l.bf16 %v2419_v8 }
0x124b   :  { %v1682_v21 = vsel %vm253_vm5, %v2969_v13, %v2421_v12  ;;  %v1681_v22 = vsel %vm253_vm5, %v2967_v11, %v2420_v14  ;;  %v1695_v11 = vrot.slane %v2911_v18, %v781_v25  ;;  %v1789_v12 = vrot.slane %v2911_v18, %v876_v7 }
0x1252   :  { %v2424_v9 = vpop.permute.xlu0 %2423 }
0x1253   :  { %v2426_v17 = vunpack.i.h.bf16 %v2424_v9  ;;  %v2425_v33 = vunpack.i.l.bf16 %v2424_v9 }
0x1255   :  { %v1684_v24 = vsel %vm303_vm7, %v1682_v21, %v2426_v17  ;;  %v1683_v32 = vsel %vm303_vm7, %v1681_v22, %v2425_v33  ;;  %v2458_v21 = vld [vmem:[#allocation2 + $0xd0] sm:$0xff]   ;;  %v2459_v22 = vld [vmem:[#allocation2 + $0xd8] sm:$0xff]  }
0x125a   :  { %v2429_v20 = vpop.permute.xlu1 %2428 }
0x125b   :  { %v2431_v41 = vunpack.i.h.bf16 %v2429_v20  ;;  %v2430_v23 = vunpack.i.l.bf16 %v2429_v20 }
0x125d   :  { %v1686_v28 = vsel %vm771_vm9, %v1684_v24, %v2431_v41  ;;  %v1685_v30 = vsel %vm771_vm9, %v1683_v32, %v2430_v23 }
0x125e   :  { %v1687_v34 = vpack.c.bf16 %v1686_v28, %v1685_v30 }
0x1260   :  { %2333 = vmatmul.mubr.msk.bf16.vlgmr.msra.gmra.mrb[44].mxu0 %vm204_vm4, %v1687_v34 }
0x1261   :  { %2360 = vmatprep.mubr.msk.bf16.mxu0 %vm2593_vm3, %v2592_v10  ;;  %2345 = vmatpush3.bf16.msra.mxu0 %v2452_v52 }
0x1262   :  { %2346 = vmatprep.subr.bf16.mxu0 %v2592_v10 }
0x1265   :  { %2347 = vmatpush3.bf16.msra.mxu0 %v2453_v27 }
0x1266   :  { %2348 = vmatprep.subr.bf16.mxu0 %v2592_v10 }
0x1269   :  { %2349 = vmatpush3.bf16.msra.mxu0 %v2454_v53  ;;  %v2000_v53 = vrot.slane %v2911_v18, %v1087_v2 }
0x126a   :  { %2350 = vmatprep.subr.bf16.mxu0 %v2592_v10 }
0x126d   :  { %2351 = vmatpush3.bf16.msra.mxu0 %v2455_v58 }
0x126e   :  { %2352 = vmatprep.subr.bf16.mxu0 %v2592_v10 }
0x1271   :  { %2353 = vmatpush3.bf16.msra.mxu0 %v2456_v54 }
0x1272   :  { %2354 = vmatprep.subr.bf16.mxu0 %v2592_v10 }
0x1275   :  { %2355 = vmatpush3.bf16.msra.mxu0 %v2457_v55  ;;  %v2006_v55 = vrot.slane %v2911_v18, %v1093_v5 }
0x1276   :  { %2356 = vmatprep.subr.bf16.mxu0 %v2592_v10 }
0x1279   :  { %2357 = vmatpush3.bf16.msra.mxu0 %v2458_v21 }
0x127a   :  { %2358 = vmatprep.subr.bf16.mxu0 %v2592_v10  ;;  %v1879_v10 = vrot.slane %v2911_v18, %v966_v35 }
0x127d   :  { %2359 = vmatpush3.bf16.msra.mxu0 %v2459_v22 }
0x1333   :  { %v1745_v13 = vpop.f32.mrb[44].mxu0 }
0x1334   :  { %v1746_v36 = vadd.f32 %v1745_v13, %v1695_v11  ;;  %v2334_v37 = vpop.f32.mrb[45].mxu0 }
0x1335   :  { %v1748_v38 = vpop.f32.mrb[46].mxu0 }
0x1336   :  { %v1749_v39 = vadd.f32 %v1748_v38, %v1695_v11  ;;  %v2335_v40 = vpop.f32.mrb[47].mxu0  ;;  %v1752_v26 = vadd.f32 %v1746_v36, %v2899_v15 }
0x1338   :  { %v1754_v42 = vsel %vm204_vm4, %v1752_v26, 0.0  ;;  %v1753_v43 = vadd.f32 %v1749_v39, %v2901_v16  ;;  %v2451_v16 = vld [vmem:[#allocation2 + $0x98] sm:$0xff]  }
0x1339   :  { %1755 = vadd.xlane.f32.xlu0 %v1754_v42  ;;  %2339 = vmatpush3.bf16.msra.mxu1 %v2451_v16 }
0x133a   :  { %v1757_v44 = vsel %vm204_vm4, %v1753_v43, 0.0 }
0x133b   :  { %1758 = vadd.xlane.f32.xlu1 %v1757_v44 }
0x13c6   :  { %v1756_v45 = vpop.xlane.xlu0 %1755 }
0x13c7   :  { %v1760_v46 = vmul.f32 0.03125, %v1756_v45 }
0x13c8   :  { %v1759_v47 = vpop.xlane.xlu1 %1758 }
0x13c9   :  { %v1762_v25 = vsub.f32 %v1752_v26, %v1760_v46  ;;  %v1761_v48 = vmul.f32 0.03125, %v1759_v47 }
0x13cb   :  { %v1763_v49 = vsub.f32 %v1753_v43, %v1761_v48  ;;  %v1764_v50 = vmul.f32 %v1762_v25, %v1762_v25 }
0x13cd   :  { %v1766_v51 = vsel %vm204_vm4, %v1764_v50, 0.0  ;;  %v1765_v57 = vmul.f32 %v1763_v49, %v1763_v49 }
0x13ce   :  { %1767 = vadd.xlane.f32.xlu0 %v1766_v51 }
0x13cf   :  { %v1769_v15 = vsel %vm204_vm4, %v1765_v57, 0.0 }
0x13d2   :  { %1770 = vadd.xlane.f32.xlu0 %v1769_v15 }
0x145b   :  { %v1768_v56 = vpop.xlane.xlu0 %1767 }
0x145c   :  { %v1772_v59 = vmul.f32 0.03125, %v1768_v56 }
0x145e   :  { %v1774_v60 = vadd.f32 1e-05, %v1772_v59 }
0x145f   :  { %v1771_v61 = vpop.xlane.xlu0 %1770 }
0x1460   :  { %2532 = vrsqrt.f32 %v1774_v60  ;;  %v1773_v62 = vmul.f32 0.03125, %v1771_v61 }
0x1462   :  { %v1775_v63 = vadd.f32 1e-05, %v1773_v62 }
0x1464   :  { %2534 = vrsqrt.f32 %v1775_v63 }
0x146a   :  { %v2533_v0 = vpop.eup %2532 }
0x146b   :  { %v1778_v4 = vmul.f32 %v2533_v0, %v1762_v25 }
0x146d   :  { %v1784_v8 = vmul.f32 %v1783_v1, %v1778_v4 }
0x146e   :  { %v2535_v6 = vpop.eup %2534 }
0x146f   :  { %v1779_v9 = vmul.f32 %v2535_v6, %v1763_v49  ;;  %v1790_v17 = vadd.f32 %v1789_v12, %v1784_v8 }
0x1471   :  { %v1785_v14 = vmul.f32 %v1783_v1, %v1779_v9 }
0x1473   :  { %v1791_v33 = vadd.f32 %v1789_v12, %v1785_v14 }
0x1475   :  { %v1792_v20 = vpack.c.bf16 %v1791_v33, %v1790_v17 }
0x1477   :  { %2341 = vmatmul.mubr.msk.bf16.vlgmr.msra.gmra.mrb[44].mxu1 %vm204_vm4, %v1792_v20 }
0x154a   :  { %v1850_v41 = vpop.f32.mrb[44].mxu1 }
0x154b   :  { %v1851_v23 = vadd.f32 %v1850_v41, %v1800_v3  ;;  %v2342_v24 = vpop.f32.mrb[45].mxu1 }
0x154c   :  { %v1853_v7 = vpop.f32.mrb[46].mxu1 }
0x154d   :  { %v1854_v32 = vadd.f32 %v1853_v7, %v1800_v3  ;;  %v2343_v28 = vpop.f32.mrb[47].mxu1  ;;  %v1857_v30 = vmax.f32 %v1851_v23, 0.0 }
0x154f   :  { %v1858_v34 = vmax.f32 %v1854_v32, 0.0 }
0x1551   :  { %v1859_v11 = vpack.c.bf16 %v1858_v34, %v1857_v30 }
0x1553   :  { %2361 = vmatmul.mubr.bf16.vlgmr.msra.gmra.mrb[48].mxu0 %v1859_v11 }
0x1626   :  { %v1962_v13 = vpop.f32.mrb[48].mxu0 }
0x1627   :  { %v1963_v36 = vadd.f32 %v1962_v13, %v1879_v10  ;;  %v2362_v37 = vpop.f32.mrb[49].mxu0 }
0x1628   :  { %v1965_v38 = vpop.f32.mrb[50].mxu0 }
0x1629   :  { %v1966_v39 = vadd.f32 %v1965_v38, %v1879_v10  ;;  %v2363_v19 = vpop.f32.mrb[51].mxu0  ;;  %v1969_v40 = vadd.f32 %v1963_v36, %v1790_v17 }
0x162b   :  { %v1971_v26 = vsel %vm204_vm4, %v1969_v40, 0.0  ;;  %v1970_v42 = vadd.f32 %v1966_v39, %v1791_v33 }
0x162c   :  { %1972 = vadd.xlane.f32.xlu1 %v1971_v26 }
0x162d   :  { %v1974_v43 = vsel %vm204_vm4, %v1970_v42, 0.0 }
0x162e   :  { %1975 = vadd.xlane.f32.xlu0 %v1974_v43 }
0x16b9   :  { %v1973_v44 = vpop.xlane.xlu1 %1972 }
0x16ba   :  { %v1977_v45 = vmul.f32 0.03125, %v1973_v44 }
0x16bb   :  { %v1976_v46 = vpop.xlane.xlu0 %1975 }
0x16bc   :  { %v1979_v47 = vsub.f32 %v1969_v40, %v1977_v45  ;;  %v1978_v25 = vmul.f32 0.03125, %v1976_v46 }
0x16be   :  { %v1980_v35 = vsub.f32 %v1970_v42, %v1978_v25  ;;  %v1981_v48 = vmul.f32 %v1979_v47, %v1979_v47 }
0x16c0   :  { %v1983_v49 = vsel %vm204_vm4, %v1981_v48, 0.0  ;;  %v1982_v50 = vmul.f32 %v1980_v35, %v1980_v35 }
0x16c1   :  { %1984 = vadd.xlane.f32.xlu1 %v1983_v49 }
0x16c2   :  { %v1986_v51 = vsel %vm204_vm4, %v1982_v50, 0.0 }
0x16c3   :  { %1987 = vadd.xlane.f32.xlu0 %v1986_v51 }
0x174e   :  { %v1985_v57 = vpop.xlane.xlu1 %1984 }
0x174f   :  { %v1989_v15 = vmul.f32 0.03125, %v1985_v57 }
0x1750   :  { %v1988_v29 = vpop.xlane.xlu0 %1987 }
0x1751   :  { %v1991_v16 = vadd.f32 1e-05, %v1989_v15  ;;  %v1990_v52 = vmul.f32 0.03125, %v1988_v29 }
0x1753   :  { %2536 = vrsqrt.f32 %v1991_v16  ;;  %v1992_v27 = vadd.f32 1e-05, %v1990_v52 }
0x1755   :  { %2538 = vrsqrt.f32 %v1992_v27 }
0x175d   :  { %v2537_v58 = vpop.eup %2536 }
0x175e   :  { %v1995_v54 = vmul.f32 %v2537_v58, %v1979_v47 }
0x175f   :  { %v2539_v56 = vpop.eup %2538 }
0x1760   :  { %v2001_v59 = vmul.f32 %v2000_v53, %v1995_v54  ;;  %v1996_v60 = vmul.f32 %v2539_v56, %v1980_v35 }
0x1762   :  { %v2002_v61 = vmul.f32 %v2000_v53, %v1996_v60  ;;  %v2007_v62 = vadd.f32 %v2006_v55, %v2001_v59 }
0x1764   :  { %v2008_v63 = vadd.f32 %v2006_v55, %v2002_v61  ;;  %2009 = vst.msk [vmem:[#allocation5] sm:$0xff] %vm204_vm4, %v2007_v62 }
0x1766   :  { %2010 = vst.msk [vmem:[#allocation5 + $0x8] sm:$0xff] %vm204_vm4, %v2008_v63 }
0x1767   :  { %2573 = shalt.err (!%p2570_p12)
}
0x1768   :  { %s2574_s18 = scalar_lea.hbm %s3088_s4, 256 }
0x1769   :  { %p2575_p13 = scmp.ne.s32.totalorder %s3088_s4, %s2574_s18  ;;  %p2578_p0 = scmp.lt.u32.totalorder %s2574_s18, %s3088_s4 }
0x176b   :  { %p2580_p1 = pnand %p2578_p0, %p2575_p13 }
0x176d   :  { %2583 = shalt.err (!%p2580_p1)
}
0x176e   :  { %s2608_s22 = smov 128  }
0x176f   :  { %2022 = dma.vmem_to_hbm [thread:$0]  %s2017_s25, 256, %s3088_s4, [#allocation4], %s2608_s22, %s2608_s22, %s2604_s2  }
0x1770   :  { %2586 = dma.done.wait [#allocation4], 256  }
0x1771   :  { %2587 = vsyncadd [#allocation4], 4294967040 }
0x1772   :  { %2026 = vsyncpa [#allocation3], 1 }
0x1773   :  { %2027 = vsyncpa [#allocation4], 1 }

</bundles_post_ra>
